<compile_context>
chip_gen: v7x
topology: tpu7x:2x2x1
jax: 0.10.0
libtpu: 0.0.40
codegen_flags: <defaults>
</compile_context>

<pallas_src>
import functools
import math

import jax
import jax.numpy as jnp
from jax.experimental import pallas as pl
from jax.experimental.pallas import tpu as pltpu


# ----------------------------------------------------------------------------- kernel

def _layernorm(x, gamma, beta, eps=1e-5):
    mu = jnp.mean(x, axis=-1, keepdims=True)
    var = jnp.mean(jnp.square(x - mu), axis=-1, keepdims=True)
    return (x - mu) * jax.lax.rsqrt(var + eps) * gamma + beta


def fused_decoder_kernel(nhead, has_am, has_kpm, *refs):
    """All decoder layers + final LayerNorm fused.  grid = (batch_block, layer).

    One grid step = one (Bb, S, D) batch block through one
    TransformerDecoderLayer.forward_post (tgt_self_attn=False, eval mode -> dropout ==
    identity).  The evolving activation lives in the output block itself (its block
    index is constant along the layer axis, so it stays VMEM-resident and is written
    back to HBM only once per batch block).
    """
    it = iter(refs)
    src_ref = next(it)                    # (Bb, S, D) f32   memory == tgt init
    pos_ref = next(it)                    # (Bb, S, D) f32   memory_pos
    am_ref = next(it) if has_am else None      # (S, S)    f32 additive, shared by batch
    kpm_ref = next(it) if has_kpm else None    # (Bb, 1, S) f32 additive
    wattn_ref = next(it)                  # (4, D, D)  bf16  [Wq*scale, Wk, Wv, Wo]
    w1_ref = next(it)                     # (D, F)     bf16
    w2_ref = next(it)                     # (F, D)     bf16
    vecs_ref = next(it)                   # (16, D)    f32   bq,bk,bv,bo,g1,be1,b2,g2,be2
    b1_ref = next(it)                     # (1, F)     f32
    gfbf_ref = next(it)                   # (2, D)     f32   final decoder LayerNorm
    out_ref = next(it)                    # (Bb, S, D) f32   output / resident activation

    layer = pl.program_id(1)
    n_layers = pl.num_programs(1)

    # First layer for this batch block: seed the resident activation with tgt (= src).
    @pl.when(layer == 0)
    def _():
        out_ref[...] = src_ref[...]

    tgt3 = out_ref[...]                   # (Bb, S, D) evolving decoder state (query)
    mem3 = src_ref[...]                   # (Bb, S, D) memory                (values)
    memk3 = mem3 + pos_ref[...]           # (Bb, S, D) memory + memory_pos   (keys)

    Bb, S, D = tgt3.shape
    hd = D // nhead
    BS = Bb * S
    cdt = wattn_ref.dtype                 # MXU compute dtype (bf16)

    tgt = tgt3.reshape(BS, D)             # flatten batch into the MXU M dimension
    mem = mem3.reshape(BS, D)
    memk = memk3.reshape(BS, D)

    vec = vecs_ref[...]                   # (16, D) f32, loaded once
    bq, bk, bv, bo = vec[0:1], vec[1:2], vec[2:3], vec[3:4]
    g1, be1, b2 = vec[4:5], vec[5:6], vec[6:7]
    g2, be2 = vec[7:8], vec[8:9]
    b1 = b1_ref[...]                      # (1, F)
    wq, wk, wv, wo = wattn_ref[0], wattn_ref[1], wattn_ref[2], wattn_ref[3]

    def mm(a, w):                         # MXU matmul, f32 accumulation
        return jnp.dot(a.astype(cdt), w, preferred_element_type=jnp.float32)

    # in-projections, M = Bb*S rows (1/sqrt(hd) folded into Wq/bq at pack time);
    # cast to bf16 ONCE here, not per head.
    q = (mm(tgt, wq) + bq).astype(cdt).reshape(Bb, S, D)
    k = (mm(memk, wk) + bk).astype(cdt).reshape(Bb, S, D)
    v = (mm(mem, wv) + bv).astype(cdt).reshape(Bb, S, D)

    # Additive attention bias: built / loaded / broadcast once, shared by all heads.
    bias = None
    if am_ref is not None:
        bias = am_ref[...][None, :, :]                       # (1, S, S)
    if kpm_ref is not None:
        kpmb = kpm_ref[...]                                  # (Bb, 1, S)
        bias = kpmb if bias is None else bias + kpmb
    if bias is not None:
        bias = jnp.broadcast_to(bias, (Bb, S, S))
    # TODO(synk): per-head (B*nhead, S, S) attn_mask variant is not supported.
    # TODO(synk): fully-masked rows yield uniform attention, not PyTorch's NaN.

    # Multi-head attention: per-head batched matmuls, heads concatenated on the lane
    # axis, then ONE full-contraction output projection (K = D, not hd).
    ctxs = []
    for h in range(nhead):                # static loop, nhead small
        lo = h * hd
        qh = q[:, :, lo:lo + hd]          # (Bb, S, hd) bf16
        kh = k[:, :, lo:lo + hd]
        vh = v[:, :, lo:lo + hd]
        s = jnp.einsum('bqd,bkd->bqk', qh, kh,
                       preferred_element_type=jnp.float32)   # (Bb, S, S) f32
        if bias is not None:
            s = s + bias
        s = s - jnp.max(s, axis=-1, keepdims=True)
        p = jnp.exp(s)
        p = p / jnp.sum(p, axis=-1, keepdims=True)           # exact softmax
        ctxs.append(jnp.einsum('bqk,bkd->bqd', p.astype(cdt), vh,
                               preferred_element_type=jnp.float32))
    ctx = jnp.concatenate(ctxs, axis=-1).reshape(BS, D)      # (BS, D) f32
    attn_out = mm(ctx, wo) + bo

    # residual + LayerNorm1            (dropout1 == identity in eval)
    x = _layernorm(tgt + attn_out, g1, be1)

    # FFN: linear2(relu(linear1(x)))   (dropout2 == identity)
    h1 = jnp.maximum(mm(x, w1_ref[...]) + b1, 0.0)
    ff = mm(h1, w2_ref[...]) + b2

    # residual + LayerNorm2            (dropout3 == identity)
    y = _layernorm(x + ff, g2, be2)
    out_ref[...] = y.reshape(Bb, S, D)

    # last layer: apply the final decoder_norm in place before HBM writeback
    @pl.when(layer == n_layers - 1)
    def _():
        gfbf = gfbf_ref[...]
        out_ref[...] = _layernorm(y, gfbf[0:1], gfbf[1:2]).reshape(Bb, S, D)


# ----------------------------------------------------------------------------- wrapper

def transformer_forward(src, pos, packed, nhead, attn_mask=None, key_padding_mask=None):
    """Equivalent of Transformer.forward (eval mode).  src, pos: (B, S, d_model) f32."""
    B, S, D = src.shape
    L = packed["wattn"].shape[0]
    F = packed["w1"].shape[2]
    NV = packed["vecs"].shape[1]
    assert D % 128 == 0 and S % 8 == 0, "demo requires lane/sublane-aligned S, D"

    # Batch block: smallest divisor of B with Bb*S >= 256 (MXU fill on v6e/v7x),
    # otherwise the whole batch (weights then stream only L times in total).
    Bb = B
    for cand in range(1, B + 1):
        if B % cand == 0 and cand * S >= 256:
            Bb = cand
            break
    nb = B // Bb

    has_am = attn_mask is not None
    has_kpm = key_padding_mask is not None

    inputs = [src, pos]
    in_specs = [
        pl.BlockSpec((Bb, S, D), lambda b, l: (b, 0, 0)),      # src (tgt init + values)
        pl.BlockSpec((Bb, S, D), lambda b, l: (b, 0, 0)),      # memory_pos
    ]

    if has_am:
        # shared 2-D mask: batch-invariant (S, S) block, fetched once.
        am = (jnp.where(attn_mask, -1e9, 0.0)
              if attn_mask.dtype == jnp.bool_ else attn_mask.astype(jnp.float32))
        inputs.append(am)
        in_specs.append(pl.BlockSpec((S, S), lambda b, l: (0, 0)))
    if has_kpm:
        # (B, 1, S) additive; broadcast over queries in-kernel (no dense B*S*S bias).
        kb = jnp.where(key_padding_mask, -1e9, 0.0).astype(jnp.float32)[:, None, :]
        inputs.append(kb)
        in_specs.append(pl.BlockSpec((Bb, 1, S), lambda b, l: (b, 0, 0)))

    inputs += [packed["wattn"], packed["w1"], packed["w2"],
               packed["vecs"], packed["b1"], packed["gfbf"]]
    in_specs += [
        pl.BlockSpec((None, 4, D, D), lambda b, l: (l, 0, 0, 0)),   # Wq,Wk,Wv,Wo
        pl.BlockSpec((None, D, F), lambda b, l: (l, 0, 0)),         # W1
        pl.BlockSpec((None, F, D), lambda b, l: (l, 0, 0)),         # W2
        pl.BlockSpec((None, NV, D), lambda b, l: (l, 0, 0)),        # packed vectors
        pl.BlockSpec((None, 1, F), lambda b, l: (l, 0, 0)),         # b1
        pl.BlockSpec((2, D), lambda b, l: (0, 0)),                  # gf, bf
    ]

    kernel = functools.partial(fused_decoder_kernel, nhead, has_am, has_kpm)
    return pl.pallas_call(
        kernel,
        out_shape=jax.ShapeDtypeStruct((B, S, D), jnp.float32),
        grid=(nb, L),
        in_specs=in_specs,
        out_specs=pl.BlockSpec((Bb, S, D), lambda b, l: (b, 0, 0)),
        compiler_params=pltpu.CompilerParams(
            dimension_semantics=("parallel", "arbitrary"),
            vmem_limit_bytes=32 * 1024 * 1024),
    )(*inputs)


# ----------------------------------------------------------------------------- params

def make_params(key, d_model, nhead, num_layers, dim_ff):
    """Synthetic parameters in PyTorch layout (Linear weights are (out, in); biases 0)."""
    def xavier(k, out_f, in_f):
        bound = math.sqrt(6.0 / (in_f + out_f))
        return jax.random.uniform(k, (out_f, in_f), jnp.float32, -bound, bound)

    layers = []
    for l in range(num_layers):
        ks = jax.random.split(jax.random.fold_in(key, l), 6)
        layers.append(dict(
            wq=xavier(ks[0], d_model, d_model),
            wk=xavier(ks[1], d_model, d_model),
            wv=xavier(ks[2], d_model, d_model),
            bq=jnp.zeros((d_model,), jnp.float32),
            bk=jnp.zeros((d_model,), jnp.float32),
            bv=jnp.zeros((d_model,), jnp.float32),
            wo=xavier(ks[3], d_model, d_model),
            bo=jnp.zeros((d_model,), jnp.float32),
            g1=jnp.ones((d_model,), jnp.float32),
            be1=jnp.zeros((d_model,), jnp.float32),
            w1=xavier(ks[4], dim_ff, d_model),
            b1=jnp.zeros((dim_ff,), jnp.float32),
            w2=xavier(ks[5], d_model, dim_ff),
            b2=jnp.zeros((d_model,), jnp.float32),
            g2=jnp.ones((d_model,), jnp.float32),
            be2=jnp.zeros((d_model,), jnp.float32),
        ))
    return dict(layers=layers,
                gf=jnp.ones((d_model,), jnp.float32),
                bf=jnp.zeros((d_model,), jnp.float32))


def pack_params(params, nhead, matmul_dtype=jnp.bfloat16):
    """Kernel layout: stack per-layer params on a leading layer axis, transpose Linear
    weights to (in, out), fold the 1/sqrt(head_dim) attention scale into Wq/bq, cast
    matmul operands to `matmul_dtype`, and consolidate into few tensors (one DMA each):
      wattn (L,4,D,D) bf16 | w1 (L,D,F) bf16 | w2 (L,F,D) bf16
      vecs  (L,16,D)  f32  = [bq*scale, bk, bv, bo, g1, be1, b2, g2, be2, 0-pad]
      b1    (L,1,F)   f32  | gfbf (2,D) f32
    """
    layers = params["layers"]
    d_model = layers[0]["wq"].shape[0]
    scale = 1.0 / math.sqrt(d_model // nhead)
    NV = 16

    wattn = jnp.stack([
        jnp.stack([(lp["wq"] * scale).T, lp["wk"].T, lp["wv"].T, lp["wo"].T], axis=0)
        for lp in layers], axis=0).astype(matmul_dtype)
    w1 = jnp.stack([lp["w1"].T for lp in layers], axis=0).astype(matmul_dtype)
    w2 = jnp.stack([lp["w2"].T for lp in layers], axis=0).astype(matmul_dtype)

    def vec_rows(lp):
        rows = jnp.stack([lp["bq"] * scale, lp["bk"], lp["bv"], lp["bo"],
                          lp["g1"], lp["be1"], lp["b2"], lp["g2"], lp["be2"]],
                         axis=0).astype(jnp.float32)
        pad = jnp.zeros((NV - rows.shape[0], d_model), jnp.float32)
        return jnp.concatenate([rows, pad], axis=0)

    vecs = jnp.stack([vec_rows(lp) for lp in layers], axis=0)
    b1 = jnp.stack([lp["b1"].reshape(1, -1) for lp in layers], axis=0).astype(jnp.float32)
    gfbf = jnp.stack([params["gf"], params["bf"]], axis=0).astype(jnp.float32)
    return dict(wattn=wattn, w1=w1, w2=w2, vecs=vecs, b1=b1, gfbf=gfbf)


# ----------------------------------------------------------------------------- reference

def reference_forward(src, pos, packed, nhead, attn_mask=None, key_padding_mask=None):
    """Pure-JAX reference of the same math (same packed bf16 weights, exact softmax)."""
    B, S, D = src.shape
    L = packed["wattn"].shape[0]
    hd = D // nhead
    cdt = packed["wattn"].dtype
    mem, memk = src, src + pos

    def mm(a, w):
        return jnp.einsum('bsd,df->bsf', a.astype(cdt), w,
                          preferred_element_type=jnp.float32)

    def ln(x, g, b):
        mu = jnp.mean(x, -1, keepdims=True)
        var = jnp.mean(jnp.square(x - mu), -1, keepdims=True)
        return (x - mu) * jax.lax.rsqrt(var + 1e-5) * g + b

    bias = jnp.zeros((B, 1, S, S), jnp.float32)
    if attn_mask is not None:
        am = (jnp.where(attn_mask, -1e9, 0.0)
              if attn_mask.dtype == jnp.bool_ else attn_mask.astype(jnp.float32))
        bias = bias + am[None, None]
    if key_padding_mask is not None:
        bias = bias + jnp.where(key_padding_mask, -1e9, 0.0)[:, None, None, :]

    out = src
    for l in range(L):
        V = packed["vecs"][l]
        bq, bk, bv, bo, g1, be1, b2, g2, be2 = (V[i] for i in range(9))
        wq, wk, wv, wo = (packed["wattn"][l, i] for i in range(4))
        q = mm(out, wq) + bq
        k = mm(memk, wk) + bk
        v = mm(mem, wv) + bv
        qh = q.reshape(B, S, nhead, hd)
        kh = k.reshape(B, S, nhead, hd)
        vh = v.reshape(B, S, nhead, hd)
        s = jnp.einsum('bqhd,bkhd->bhqk', qh.astype(cdt), kh.astype(cdt),
                       preferred_element_type=jnp.float32) + bias
        p = jax.nn.softmax(s, axis=-1)
        ctx = jnp.einsum('bhqk,bkhd->bqhd', p.astype(cdt), vh.astype(cdt),
                         preferred_element_type=jnp.float32).reshape(B, S, D)
        attn = mm(ctx, wo) + bo
        x = ln(out + attn, g1, be1)
        h1 = jnp.maximum(mm(x, packed["w1"][l]) + packed["b1"][l, 0], 0.0)
        ff = mm(h1, packed["w2"][l]) + b2
        out = ln(x + ff, g2, be2)
    return ln(out, packed["gfbf"][0], packed["gfbf"][1])


# ----------------------------------------------------------------------------- main

if __name__ == "__main__":
    B, S = 2, 8
    # lane-dense small config: d_model and dim_ff are multiples of 128 lanes
    d_model, nhead, num_layers, dim_ff = 128, 4, 2, 256

    key = jax.random.PRNGKey(0)
    k_src, k_pos, k_par = jax.random.split(key, 3)
    src = jax.random.normal(k_src, (B, S, d_model), jnp.float32)
    pos = jax.random.normal(k_pos, (B, S, d_model), jnp.float32)

    params = make_params(k_par, d_model, nhead, num_layers, dim_ff)
    packed = pack_params(params, nhead)

    fwd = jax.jit(functools.partial(transformer_forward, nhead=nhead))

    # 1) no-mask path
    hs = jax.block_until_ready(fwd(src, pos, packed))
    ref = reference_forward(src, pos, packed, nhead)
    assert hs.shape == (B, S, d_model)
    assert bool(jnp.all(jnp.isfinite(hs)))
    err = float(jnp.max(jnp.abs(hs - ref)))
    assert err < 5e-2, f"no-mask path deviates from reference: max_err={err}"

    # 2) masked path: shared 2-D bool attn_mask + key_padding_mask
    attn_mask = jnp.triu(jnp.ones((S, S), jnp.bool_), k=1)
    kpm = jnp.zeros((B, S), jnp.bool_).at[:, -2:].set(True)
    hs_m = jax.block_until_ready(
        fwd(src, pos, packed, attn_mask=attn_mask, key_padding_mask=kpm))
    ref_m = reference_forward(src, pos, packed, nhead,
                              attn_mask=attn_mask, key_padding_mask=kpm)
    assert bool(jnp.all(jnp.isfinite(hs_m)))
    err_m = float(jnp.max(jnp.abs(hs_m - ref_m)))
    assert err_m < 5e-2, f"masked path deviates from reference: max_err={err_m}"

    print("KERNEL_OK")
</pallas_src>

<mosaic_0001>
module attributes {stable_mosaic.version = 11 : i64} {
  func.func @fused_decoder_kernel(%arg0: i32, %arg1: i32, %arg2: memref<2x8x128xf32, #tpu.memory_space<vmem>>, %arg3: memref<2x8x128xf32, #tpu.memory_space<vmem>>, %arg4: memref<1x4x128x128xbf16, #tpu.memory_space<vmem>>, %arg5: memref<1x128x256xbf16, #tpu.memory_space<vmem>>, %arg6: memref<1x256x128xbf16, #tpu.memory_space<vmem>>, %arg7: memref<1x16x128xf32, #tpu.memory_space<vmem>>, %arg8: memref<1x1x256xf32, #tpu.memory_space<vmem>>, %arg9: memref<2x128xf32, #tpu.memory_space<vmem>>, %arg10: memref<2x8x128xf32, #tpu.memory_space<vmem>>) attributes {dimension_semantics = [#tpu.dimension_semantics<parallel>, #tpu.dimension_semantics<arbitrary>], iteration_bounds = array<i64: 1, 2>, scalar_prefetch = 0 : i64, scratch_operands = 0 : i64, tpu.core_type = #tpu.core_type<tc>, window_params = [{transform_indices = @transform_0, window_bounds = array<i64: 2, 8, 128>}, {transform_indices = @transform_1, window_bounds = array<i64: 2, 8, 128>}, {transform_indices = @transform_2, window_bounds = array<i64: 1, 4, 128, 128>}, {transform_indices = @transform_3, window_bounds = array<i64: 1, 128, 256>}, {transform_indices = @transform_4, window_bounds = array<i64: 1, 256, 128>}, {transform_indices = @transform_5, window_bounds = array<i64: 1, 16, 128>}, {transform_indices = @transform_6, window_bounds = array<i64: 1, 1, 256>}, {pipeline_mode = #tpu.pipeline_mode<synchronous>, transform_indices = @transform_7, window_bounds = array<i64: 2, 128>}, {transform_indices = @transform_8, window_bounds = array<i64: 2, 8, 128>}]} {
    %c0_i32 = arith.constant 0 : i32
    %0 = arith.cmpi eq, %arg1, %c0_i32 : i32
    %1 = arith.extui %0 : i1 to i32
    %c0_i32_0 = arith.constant 0 : i32
    %2 = arith.cmpi ne, %1, %c0_i32_0 : i32
    scf.if %2 {
      %c0_70 = arith.constant 0 : index
      %c0_71 = arith.constant 0 : index
      %c0_72 = arith.constant 0 : index
      %180 = vector.load %arg2[%c0_70, %c0_71, %c0_72] : memref<2x8x128xf32, #tpu.memory_space<vmem>>, vector<2x8x128xf32>
      %c0_73 = arith.constant 0 : index
      %c0_74 = arith.constant 0 : index
      %c0_75 = arith.constant 0 : index
      %181 = vector.load %arg10[%c0_73, %c0_74, %c0_75] : memref<2x8x128xf32, #tpu.memory_space<vmem>>, vector<2x8x128xf32>
      tpu.vector_store %arg10[%c0_73, %c0_74, %c0_75], %180 {strides = array<i32>} : memref<2x8x128xf32, #tpu.memory_space<vmem>>, vector<2x8x128xf32>,
    } else {
    }
    %c0 = arith.constant 0 : index
    %c0_1 = arith.constant 0 : index
    %c0_2 = arith.constant 0 : index
    %3 = vector.load %arg10[%c0, %c0_1, %c0_2] : memref<2x8x128xf32, #tpu.memory_space<vmem>>, vector<2x8x128xf32>
    %c0_3 = arith.constant 0 : index
    %c0_4 = arith.constant 0 : index
    %c0_5 = arith.constant 0 : index
    %4 = vector.load %arg2[%c0_3, %c0_4, %c0_5] : memref<2x8x128xf32, #tpu.memory_space<vmem>>, vector<2x8x128xf32>
    %c0_6 = arith.constant 0 : index
    %c0_7 = arith.constant 0 : index
    %c0_8 = arith.constant 0 : index
    %5 = vector.load %arg3[%c0_6, %c0_7, %c0_8] : memref<2x8x128xf32, #tpu.memory_space<vmem>>, vector<2x8x128xf32>
    %6 = arith.addf %4, %5 : vector<2x8x128xf32>
    %7 = vector.shape_cast %3 : vector<2x8x128xf32> to vector<16x128xf32>
    %8 = vector.shape_cast %4 : vector<2x8x128xf32> to vector<16x128xf32>
    %9 = vector.shape_cast %6 : vector<2x8x128xf32> to vector<16x128xf32>
    %c0_9 = arith.constant 0 : index
    %c0_10 = arith.constant 0 : index
    %c0_11 = arith.constant 0 : index
    %10 = vector.load %arg7[%c0_9, %c0_10, %c0_11] : memref<1x16x128xf32, #tpu.memory_space<vmem>>, vector<1x16x128xf32>
    %11 = vector.shape_cast %10 : vector<1x16x128xf32> to vector<16x128xf32>
    %12 = vector.extract_strided_slice %11 {offsets = [0, 0], sizes = [1, 128], strides = [1, 1]} : vector<16x128xf32> to vector<1x128xf32>
    %13 = vector.extract_strided_slice %11 {offsets = [1, 0], sizes = [1, 128], strides = [1, 1]} : vector<16x128xf32> to vector<1x128xf32>
    %14 = vector.extract_strided_slice %11 {offsets = [2, 0], sizes = [1, 128], strides = [1, 1]} : vector<16x128xf32> to vector<1x128xf32>
    %15 = vector.extract_strided_slice %11 {offsets = [3, 0], sizes = [1, 128], strides = [1, 1]} : vector<16x128xf32> to vector<1x128xf32>
    %16 = vector.extract_strided_slice %11 {offsets = [4, 0], sizes = [1, 128], strides = [1, 1]} : vector<16x128xf32> to vector<1x128xf32>
    %17 = vector.extract_strided_slice %11 {offsets = [5, 0], sizes = [1, 128], strides = [1, 1]} : vector<16x128xf32> to vector<1x128xf32>
    %18 = vector.extract_strided_slice %11 {offsets = [6, 0], sizes = [1, 128], strides = [1, 1]} : vector<16x128xf32> to vector<1x128xf32>
    %19 = vector.extract_strided_slice %11 {offsets = [7, 0], sizes = [1, 128], strides = [1, 1]} : vector<16x128xf32> to vector<1x128xf32>
    %20 = vector.extract_strided_slice %11 {offsets = [8, 0], sizes = [1, 128], strides = [1, 1]} : vector<16x128xf32> to vector<1x128xf32>
    %c0_12 = arith.constant 0 : index
    %c0_13 = arith.constant 0 : index
    %c0_14 = arith.constant 0 : index
    %21 = vector.load %arg8[%c0_12, %c0_13, %c0_14] : memref<1x1x256xf32, #tpu.memory_space<vmem>>, vector<1x1x256xf32>
    %22 = vector.shape_cast %21 : vector<1x1x256xf32> to vector<1x256xf32>
    %c0_15 = arith.constant 0 : index
    %c0_16 = arith.constant 0 : index
    %c0_17 = arith.constant 0 : index
    %c0_18 = arith.constant 0 : index
    %23 = vector.load %arg4[%c0_15, %c0_16, %c0_17, %c0_18] : memref<1x4x128x128xbf16, #tpu.memory_space<vmem>>, vector<1x1x128x128xbf16>
    %24 = vector.shape_cast %23 : vector<1x1x128x128xbf16> to vector<128x128xbf16>
    %c0_19 = arith.constant 0 : index
    %c1 = arith.constant 1 : index
    %c0_20 = arith.constant 0 : index
    %c0_21 = arith.constant 0 : index
    %25 = vector.load %arg4[%c0_19, %c1, %c0_20, %c0_21] : memref<1x4x128x128xbf16, #tpu.memory_space<vmem>>, vector<1x1x128x128xbf16>
    %26 = vector.shape_cast %25 : vector<1x1x128x128xbf16> to vector<128x128xbf16>
    %c0_22 = arith.constant 0 : index
    %c2 = arith.constant 2 : index
    %c0_23 = arith.constant 0 : index
    %c0_24 = arith.constant 0 : index
    %27 = vector.load %arg4[%c0_22, %c2, %c0_23, %c0_24] : memref<1x4x128x128xbf16, #tpu.memory_space<vmem>>, vector<1x1x128x128xbf16>
    %28 = vector.shape_cast %27 : vector<1x1x128x128xbf16> to vector<128x128xbf16>
    %c0_25 = arith.constant 0 : index
    %c3 = arith.constant 3 : index
    %c0_26 = arith.constant 0 : index
    %c0_27 = arith.constant 0 : index
    %29 = vector.load %arg4[%c0_25, %c3, %c0_26, %c0_27] : memref<1x4x128x128xbf16, #tpu.memory_space<vmem>>, vector<1x1x128x128xbf16>
    %30 = vector.shape_cast %29 : vector<1x1x128x128xbf16> to vector<128x128xbf16>
    %31 = arith.truncf %7 : vector<16x128xf32> to vector<16x128xbf16>
    %cst = arith.constant dense<0.000000e+00> : vector<16x128xf32>
    %32 = tpu.matmul %31, %24, %cst {dimension_numbers = #tpu.dot_dimension_numbers<[1], [0], [0], [1], [0, 0, 1, 1], [], []>} : vector<16x128xbf16>, vector<128x128xbf16>, vector<16x128xf32> -> vector<16x128xf32>
    %33 = vector.broadcast %12 : vector<1x128xf32> to vector<16x128xf32>
    %34 = arith.addf %32, %33 : vector<16x128xf32>
    %35 = arith.truncf %34 : vector<16x128xf32> to vector<16x128xbf16>
    %36 = vector.shape_cast %35 : vector<16x128xbf16> to vector<2x8x128xbf16>
    %37 = arith.truncf %9 : vector<16x128xf32> to vector<16x128xbf16>
    %cst_28 = arith.constant dense<0.000000e+00> : vector<16x128xf32>
    %38 = tpu.matmul %37, %26, %cst_28 {dimension_numbers = #tpu.dot_dimension_numbers<[1], [0], [0], [1], [0, 0, 1, 1], [], []>} : vector<16x128xbf16>, vector<128x128xbf16>, vector<16x128xf32> -> vector<16x128xf32>
    %39 = vector.broadcast %13 : vector<1x128xf32> to vector<16x128xf32>
    %40 = arith.addf %38, %39 : vector<16x128xf32>
    %41 = arith.truncf %40 : vector<16x128xf32> to vector<16x128xbf16>
    %42 = vector.shape_cast %41 : vector<16x128xbf16> to vector<2x8x128xbf16>
    %43 = arith.truncf %8 : vector<16x128xf32> to vector<16x128xbf16>
    %cst_29 = arith.constant dense<0.000000e+00> : vector<16x128xf32>
    %44 = tpu.matmul %43, %28, %cst_29 {dimension_numbers = #tpu.dot_dimension_numbers<[1], [0], [0], [1], [0, 0, 1, 1], [], []>} : vector<16x128xbf16>, vector<128x128xbf16>, vector<16x128xf32> -> vector<16x128xf32>
    %45 = vector.broadcast %14 : vector<1x128xf32> to vector<16x128xf32>
    %46 = arith.addf %44, %45 : vector<16x128xf32>
    %47 = arith.truncf %46 : vector<16x128xf32> to vector<16x128xbf16>
    %48 = vector.shape_cast %47 : vector<16x128xbf16> to vector<2x8x128xbf16>
    %49 = vector.extract_strided_slice %36 {offsets = [0, 0, 0], sizes = [2, 8, 32], strides = [1, 1, 1]} : vector<2x8x128xbf16> to vector<2x8x32xbf16>
    %50 = vector.extract_strided_slice %42 {offsets = [0, 0, 0], sizes = [2, 8, 32], strides = [1, 1, 1]} : vector<2x8x128xbf16> to vector<2x8x32xbf16>
    %51 = vector.extract_strided_slice %48 {offsets = [0, 0, 0], sizes = [2, 8, 32], strides = [1, 1, 1]} : vector<2x8x128xbf16> to vector<2x8x32xbf16>
    "tpu.trace_start"() <{level = 10 : i32, message = "bqd,bkd->bqk"}> : () -> ()
    %cst_30 = arith.constant dense<0.000000e+00> : vector<2x8x8xf32>
    %52 = tpu.matmul %49, %50, %cst_30 {dimension_numbers = #tpu.dot_dimension_numbers<[2], [2], [1], [1], [0, 0, 0, 1, 1, 1], [0], [0]>} : vector<2x8x32xbf16>, vector<2x8x32xbf16>, vector<2x8x8xf32> -> vector<2x8x8xf32>
    "tpu.trace_stop"() : () -> ()
    %cst_31 = arith.constant dense<0xFF800000> : vector<2x8xf32>
    %53 = vector.multi_reduction <maximumf>, %52, %cst_31 [2] : vector<2x8x8xf32> to vector<2x8xf32>
    %54 = vector.shape_cast %53 : vector<2x8xf32> to vector<2x8x1xf32>
    %55 = vector.broadcast %54 : vector<2x8x1xf32> to vector<2x8x8xf32>
    %56 = arith.subf %52, %55 : vector<2x8x8xf32>
    %57 = math.exp %56 : vector<2x8x8xf32>
    %cst_32 = arith.constant dense<0.000000e+00> : vector<2x8xf32>
    %58 = vector.multi_reduction <add>, %57, %cst_32 [2] : vector<2x8x8xf32> to vector<2x8xf32>
    %59 = vector.shape_cast %58 : vector<2x8xf32> to vector<2x8x1xf32>
    %60 = vector.broadcast %59 : vector<2x8x1xf32> to vector<2x8x8xf32>
    %61 = arith.divf %57, %60 : vector<2x8x8xf32>
    %62 = arith.truncf %61 : vector<2x8x8xf32> to vector<2x8x8xbf16>
    "tpu.trace_start"() <{level = 10 : i32, message = "bqk,bkd->bqd"}> : () -> ()
    %cst_33 = arith.constant dense<0.000000e+00> : vector<2x8x32xf32>
    %63 = tpu.matmul %62, %51, %cst_33 {dimension_numbers = #tpu.dot_dimension_numbers<[2], [1], [1], [2], [0, 0, 0, 1, 1, 2], [0], [0]>} : vector<2x8x8xbf16>, vector<2x8x32xbf16>, vector<2x8x32xf32> -> vector<2x8x32xf32>
    "tpu.trace_stop"() : () -> ()
    %64 = vector.extract_strided_slice %36 {offsets = [0, 0, 32], sizes = [2, 8, 32], strides = [1, 1, 1]} : vector<2x8x128xbf16> to vector<2x8x32xbf16>
    %65 = vector.extract_strided_slice %42 {offsets = [0, 0, 32], sizes = [2, 8, 32], strides = [1, 1, 1]} : vector<2x8x128xbf16> to vector<2x8x32xbf16>
    %66 = vector.extract_strided_slice %48 {offsets = [0, 0, 32], sizes = [2, 8, 32], strides = [1, 1, 1]} : vector<2x8x128xbf16> to vector<2x8x32xbf16>
    "tpu.trace_start"() <{level = 10 : i32, message = "bqd,bkd->bqk"}> : () -> ()
    %cst_34 = arith.constant dense<0.000000e+00> : vector<2x8x8xf32>
    %67 = tpu.matmul %64, %65, %cst_34 {dimension_numbers = #tpu.dot_dimension_numbers<[2], [2], [1], [1], [0, 0, 0, 1, 1, 1], [0], [0]>} : vector<2x8x32xbf16>, vector<2x8x32xbf16>, vector<2x8x8xf32> -> vector<2x8x8xf32>
    "tpu.trace_stop"() : () -> ()
    %cst_35 = arith.constant dense<0xFF800000> : vector<2x8xf32>
    %68 = vector.multi_reduction <maximumf>, %67, %cst_35 [2] : vector<2x8x8xf32> to vector<2x8xf32>
    %69 = vector.shape_cast %68 : vector<2x8xf32> to vector<2x8x1xf32>
    %70 = vector.broadcast %69 : vector<2x8x1xf32> to vector<2x8x8xf32>
    %71 = arith.subf %67, %70 : vector<2x8x8xf32>
    %72 = math.exp %71 : vector<2x8x8xf32>
    %cst_36 = arith.constant dense<0.000000e+00> : vector<2x8xf32>
    %73 = vector.multi_reduction <add>, %72, %cst_36 [2] : vector<2x8x8xf32> to vector<2x8xf32>
    %74 = vector.shape_cast %73 : vector<2x8xf32> to vector<2x8x1xf32>
    %75 = vector.broadcast %74 : vector<2x8x1xf32> to vector<2x8x8xf32>
    %76 = arith.divf %72, %75 : vector<2x8x8xf32>
    %77 = arith.truncf %76 : vector<2x8x8xf32> to vector<2x8x8xbf16>
    "tpu.trace_start"() <{level = 10 : i32, message = "bqk,bkd->bqd"}> : () -> ()
    %cst_37 = arith.constant dense<0.000000e+00> : vector<2x8x32xf32>
    %78 = tpu.matmul %77, %66, %cst_37 {dimension_numbers = #tpu.dot_dimension_numbers<[2], [1], [1], [2], [0, 0, 0, 1, 1, 2], [0], [0]>} : vector<2x8x8xbf16>, vector<2x8x32xbf16>, vector<2x8x32xf32> -> vector<2x8x32xf32>
    "tpu.trace_stop"() : () -> ()
    %79 = vector.extract_strided_slice %36 {offsets = [0, 0, 64], sizes = [2, 8, 32], strides = [1, 1, 1]} : vector<2x8x128xbf16> to vector<2x8x32xbf16>
    %80 = vector.extract_strided_slice %42 {offsets = [0, 0, 64], sizes = [2, 8, 32], strides = [1, 1, 1]} : vector<2x8x128xbf16> to vector<2x8x32xbf16>
    %81 = vector.extract_strided_slice %48 {offsets = [0, 0, 64], sizes = [2, 8, 32], strides = [1, 1, 1]} : vector<2x8x128xbf16> to vector<2x8x32xbf16>
    "tpu.trace_start"() <{level = 10 : i32, message = "bqd,bkd->bqk"}> : () -> ()
    %cst_38 = arith.constant dense<0.000000e+00> : vector<2x8x8xf32>
    %82 = tpu.matmul %79, %80, %cst_38 {dimension_numbers = #tpu.dot_dimension_numbers<[2], [2], [1], [1], [0, 0, 0, 1, 1, 1], [0], [0]>} : vector<2x8x32xbf16>, vector<2x8x32xbf16>, vector<2x8x8xf32> -> vector<2x8x8xf32>
    "tpu.trace_stop"() : () -> ()
    %cst_39 = arith.constant dense<0xFF800000> : vector<2x8xf32>
    %83 = vector.multi_reduction <maximumf>, %82, %cst_39 [2] : vector<2x8x8xf32> to vector<2x8xf32>
    %84 = vector.shape_cast %83 : vector<2x8xf32> to vector<2x8x1xf32>
    %85 = vector.broadcast %84 : vector<2x8x1xf32> to vector<2x8x8xf32>
    %86 = arith.subf %82, %85 : vector<2x8x8xf32>
    %87 = math.exp %86 : vector<2x8x8xf32>
    %cst_40 = arith.constant dense<0.000000e+00> : vector<2x8xf32>
    %88 = vector.multi_reduction <add>, %87, %cst_40 [2] : vector<2x8x8xf32> to vector<2x8xf32>
    %89 = vector.shape_cast %88 : vector<2x8xf32> to vector<2x8x1xf32>
    %90 = vector.broadcast %89 : vector<2x8x1xf32> to vector<2x8x8xf32>
    %91 = arith.divf %87, %90 : vector<2x8x8xf32>
    %92 = arith.truncf %91 : vector<2x8x8xf32> to vector<2x8x8xbf16>
    "tpu.trace_start"() <{level = 10 : i32, message = "bqk,bkd->bqd"}> : () -> ()
    %cst_41 = arith.constant dense<0.000000e+00> : vector<2x8x32xf32>
    %93 = tpu.matmul %92, %81, %cst_41 {dimension_numbers = #tpu.dot_dimension_numbers<[2], [1], [1], [2], [0, 0, 0, 1, 1, 2], [0], [0]>} : vector<2x8x8xbf16>, vector<2x8x32xbf16>, vector<2x8x32xf32> -> vector<2x8x32xf32>
    "tpu.trace_stop"() : () -> ()
    %94 = vector.extract_strided_slice %36 {offsets = [0, 0, 96], sizes = [2, 8, 32], strides = [1, 1, 1]} : vector<2x8x128xbf16> to vector<2x8x32xbf16>
    %95 = vector.extract_strided_slice %42 {offsets = [0, 0, 96], sizes = [2, 8, 32], strides = [1, 1, 1]} : vector<2x8x128xbf16> to vector<2x8x32xbf16>
    %96 = vector.extract_strided_slice %48 {offsets = [0, 0, 96], sizes = [2, 8, 32], strides = [1, 1, 1]} : vector<2x8x128xbf16> to vector<2x8x32xbf16>
    "tpu.trace_start"() <{level = 10 : i32, message = "bqd,bkd->bqk"}> : () -> ()
    %cst_42 = arith.constant dense<0.000000e+00> : vector<2x8x8xf32>
    %97 = tpu.matmul %94, %95, %cst_42 {dimension_numbers = #tpu.dot_dimension_numbers<[2], [2], [1], [1], [0, 0, 0, 1, 1, 1], [0], [0]>} : vector<2x8x32xbf16>, vector<2x8x32xbf16>, vector<2x8x8xf32> -> vector<2x8x8xf32>
    "tpu.trace_stop"() : () -> ()
    %cst_43 = arith.constant dense<0xFF800000> : vector<2x8xf32>
    %98 = vector.multi_reduction <maximumf>, %97, %cst_43 [2] : vector<2x8x8xf32> to vector<2x8xf32>
    %99 = vector.shape_cast %98 : vector<2x8xf32> to vector<2x8x1xf32>
    %100 = vector.broadcast %99 : vector<2x8x1xf32> to vector<2x8x8xf32>
    %101 = arith.subf %97, %100 : vector<2x8x8xf32>
    %102 = math.exp %101 : vector<2x8x8xf32>
    %cst_44 = arith.constant dense<0.000000e+00> : vector<2x8xf32>
    %103 = vector.multi_reduction <add>, %102, %cst_44 [2] : vector<2x8x8xf32> to vector<2x8xf32>
    %104 = vector.shape_cast %103 : vector<2x8xf32> to vector<2x8x1xf32>
    %105 = vector.broadcast %104 : vector<2x8x1xf32> to vector<2x8x8xf32>
    %106 = arith.divf %102, %105 : vector<2x8x8xf32>
    %107 = arith.truncf %106 : vector<2x8x8xf32> to vector<2x8x8xbf16>
    "tpu.trace_start"() <{level = 10 : i32, message = "bqk,bkd->bqd"}> : () -> ()
    %cst_45 = arith.constant dense<0.000000e+00> : vector<2x8x32xf32>
    %108 = tpu.matmul %107, %96, %cst_45 {dimension_numbers = #tpu.dot_dimension_numbers<[2], [1], [1], [2], [0, 0, 0, 1, 1, 2], [0], [0]>} : vector<2x8x8xbf16>, vector<2x8x32xbf16>, vector<2x8x32xf32> -> vector<2x8x32xf32>
    "tpu.trace_stop"() : () -> ()
    %109 = tpu.concatenate %63, %78, %93, %108 in 2 : vector<2x8x32xf32>, vector<2x8x32xf32>, vector<2x8x32xf32>, vector<2x8x32xf32> -> vector<2x8x128xf32>
    %110 = vector.shape_cast %109 : vector<2x8x128xf32> to vector<16x128xf32>
    %111 = arith.truncf %110 : vector<16x128xf32> to vector<16x128xbf16>
    %cst_46 = arith.constant dense<0.000000e+00> : vector<16x128xf32>
    %112 = tpu.matmul %111, %30, %cst_46 {dimension_numbers = #tpu.dot_dimension_numbers<[1], [0], [0], [1], [0, 0, 1, 1], [], []>} : vector<16x128xbf16>, vector<128x128xbf16>, vector<16x128xf32> -> vector<16x128xf32>
    %113 = vector.broadcast %15 : vector<1x128xf32> to vector<16x128xf32>
    %114 = arith.addf %112, %113 : vector<16x128xf32>
    %115 = arith.addf %7, %114 : vector<16x128xf32>
    %cst_47 = arith.constant dense<0.000000e+00> : vector<16xf32>
    %116 = vector.multi_reduction <add>, %115, %cst_47 [1] : vector<16x128xf32> to vector<16xf32>
    %117 = vector.shape_cast %116 : vector<16xf32> to vector<16x1xf32>
    %cst_48 = arith.constant 1.280000e+02 : f32
    %118 = vector.broadcast %cst_48 : f32 to vector<16x1xf32>
    %119 = arith.divf %117, %118 : vector<16x1xf32>
    %120 = vector.broadcast %119 : vector<16x1xf32> to vector<16x128xf32>
    %121 = arith.subf %115, %120 : vector<16x128xf32>
    %122 = arith.mulf %121, %121 : vector<16x128xf32>
    %cst_49 = arith.constant dense<0.000000e+00> : vector<16xf32>
    %123 = vector.multi_reduction <add>, %122, %cst_49 [1] : vector<16x128xf32> to vector<16xf32>
    %124 = vector.shape_cast %123 : vector<16xf32> to vector<16x1xf32>
    %cst_50 = arith.constant 1.280000e+02 : f32
    %125 = vector.broadcast %cst_50 : f32 to vector<16x1xf32>
    %126 = arith.divf %124, %125 : vector<16x1xf32>
    %127 = vector.broadcast %119 : vector<16x1xf32> to vector<16x128xf32>
    %128 = arith.subf %115, %127 : vector<16x128xf32>
    %cst_51 = arith.constant 9.99999974E-6 : f32
    %129 = vector.broadcast %cst_51 : f32 to vector<16x1xf32>
    %130 = arith.addf %126, %129 : vector<16x1xf32>
    %131 = math.rsqrt %130 : vector<16x1xf32>
    %132 = vector.broadcast %131 : vector<16x1xf32> to vector<16x128xf32>
    %133 = arith.mulf %128, %132 : vector<16x128xf32>
    %134 = vector.broadcast %16 : vector<1x128xf32> to vector<16x128xf32>
    %135 = arith.mulf %133, %134 : vector<16x128xf32>
    %136 = vector.broadcast %17 : vector<1x128xf32> to vector<16x128xf32>
    %137 = arith.addf %135, %136 : vector<16x128xf32>
    %c0_52 = arith.constant 0 : index
    %c0_53 = arith.constant 0 : index
    %c0_54 = arith.constant 0 : index
    %138 = vector.load %arg5[%c0_52, %c0_53, %c0_54] : memref<1x128x256xbf16, #tpu.memory_space<vmem>>, vector<1x128x256xbf16>
    %139 = vector.shape_cast %138 : vector<1x128x256xbf16> to vector<128x256xbf16>
    %140 = arith.truncf %137 : vector<16x128xf32> to vector<16x128xbf16>
    %cst_55 = arith.constant dense<0.000000e+00> : vector<16x256xf32>
    %141 = tpu.matmul %140, %139, %cst_55 {dimension_numbers = #tpu.dot_dimension_numbers<[1], [0], [0], [1], [0, 0, 1, 1], [], []>} : vector<16x128xbf16>, vector<128x256xbf16>, vector<16x256xf32> -> vector<16x256xf32>
    %142 = vector.broadcast %22 : vector<1x256xf32> to vector<16x256xf32>
    %143 = arith.addf %141, %142 : vector<16x256xf32>
    %cst_56 = arith.constant 0.000000e+00 : f32
    %144 = vector.broadcast %cst_56 : f32 to vector<16x256xf32>
    %145 = arith.maximumf %143, %144 : vector<16x256xf32>
    %c0_57 = arith.constant 0 : index
    %c0_58 = arith.constant 0 : index
    %c0_59 = arith.constant 0 : index
    %146 = vector.load %arg6[%c0_57, %c0_58, %c0_59] : memref<1x256x128xbf16, #tpu.memory_space<vmem>>, vector<1x256x128xbf16>
    %147 = vector.shape_cast %146 : vector<1x256x128xbf16> to vector<256x128xbf16>
    %148 = arith.truncf %145 : vector<16x256xf32> to vector<16x256xbf16>
    %cst_60 = arith.constant dense<0.000000e+00> : vector<16x128xf32>
    %149 = tpu.matmul %148, %147, %cst_60 {dimension_numbers = #tpu.dot_dimension_numbers<[1], [0], [0], [1], [0, 0, 1, 1], [], []>} : vector<16x256xbf16>, vector<256x128xbf16>, vector<16x128xf32> -> vector<16x128xf32>
    %150 = vector.broadcast %18 : vector<1x128xf32> to vector<16x128xf32>
    %151 = arith.addf %149, %150 : vector<16x128xf32>
    %152 = arith.addf %137, %151 : vector<16x128xf32>
    %cst_61 = arith.constant dense<0.000000e+00> : vector<16xf32>
    %153 = vector.multi_reduction <add>, %152, %cst_61 [1] : vector<16x128xf32> to vector<16xf32>
    %154 = vector.shape_cast %153 : vector<16xf32> to vector<16x1xf32>
    %cst_62 = arith.constant 1.280000e+02 : f32
    %155 = vector.broadcast %cst_62 : f32 to vector<16x1xf32>
    %156 = arith.divf %154, %155 : vector<16x1xf32>
    %157 = vector.broadcast %156 : vector<16x1xf32> to vector<16x128xf32>
    %158 = arith.subf %152, %157 : vector<16x128xf32>
    %159 = arith.mulf %158, %158 : vector<16x128xf32>
    %cst_63 = arith.constant dense<0.000000e+00> : vector<16xf32>
    %160 = vector.multi_reduction <add>, %159, %cst_63 [1] : vector<16x128xf32> to vector<16xf32>
    %161 = vector.shape_cast %160 : vector<16xf32> to vector<16x1xf32>
    %cst_64 = arith.constant 1.280000e+02 : f32
    %162 = vector.broadcast %cst_64 : f32 to vector<16x1xf32>
    %163 = arith.divf %161, %162 : vector<16x1xf32>
    %164 = vector.broadcast %156 : vector<16x1xf32> to vector<16x128xf32>
    %165 = arith.subf %152, %164 : vector<16x128xf32>
    %cst_65 = arith.constant 9.99999974E-6 : f32
    %166 = vector.broadcast %cst_65 : f32 to vector<16x1xf32>
    %167 = arith.addf %163, %166 : vector<16x1xf32>
    %168 = math.rsqrt %167 : vector<16x1xf32>
    %169 = vector.broadcast %168 : vector<16x1xf32> to vector<16x128xf32>
    %170 = arith.mulf %165, %169 : vector<16x128xf32>
    %171 = vector.broadcast %19 : vector<1x128xf32> to vector<16x128xf32>
    %172 = arith.mulf %170, %171 : vector<16x128xf32>
    %173 = vector.broadcast %20 : vector<1x128xf32> to vector<16x128xf32>
    %174 = arith.addf %172, %173 : vector<16x128xf32>
    %175 = vector.shape_cast %174 : vector<16x128xf32> to vector<2x8x128xf32>
    %c0_66 = arith.constant 0 : index
    %c0_67 = arith.constant 0 : index
    %c0_68 = arith.constant 0 : index
    %176 = vector.load %arg10[%c0_66, %c0_67, %c0_68] : memref<2x8x128xf32, #tpu.memory_space<vmem>>, vector<2x8x128xf32>
    tpu.vector_store %arg10[%c0_66, %c0_67, %c0_68], %175 {strides = array<i32>} : memref<2x8x128xf32, #tpu.memory_space<vmem>>, vector<2x8x128xf32>,
    %c1_i32 = arith.constant 1 : i32
    %177 = arith.cmpi eq, %arg1, %c1_i32 : i32
    %178 = arith.extui %177 : i1 to i32
    %c0_i32_69 = arith.constant 0 : i32
    %179 = arith.cmpi ne, %178, %c0_i32_69 : i32
    scf.if %179 {
      %c0_70 = arith.constant 0 : index
      %c0_71 = arith.constant 0 : index
      %180 = vector.load %arg9[%c0_70, %c0_71] : memref<2x128xf32, #tpu.memory_space<vmem>>, vector<2x128xf32>
      %181 = vector.extract_strided_slice %180 {offsets = [0, 0], sizes = [1, 128], strides = [1, 1]} : vector<2x128xf32> to vector<1x128xf32>
      %182 = vector.extract_strided_slice %180 {offsets = [1, 0], sizes = [1, 128], strides = [1, 1]} : vector<2x128xf32> to vector<1x128xf32>
      %cst_72 = arith.constant dense<0.000000e+00> : vector<16xf32>
      %183 = vector.multi_reduction <add>, %174, %cst_72 [1] : vector<16x128xf32> to vector<16xf32>
      %184 = vector.shape_cast %183 : vector<16xf32> to vector<16x1xf32>
      %cst_73 = arith.constant 1.280000e+02 : f32
      %185 = vector.broadcast %cst_73 : f32 to vector<16x1xf32>
      %186 = arith.divf %184, %185 : vector<16x1xf32>
      %187 = vector.broadcast %186 : vector<16x1xf32> to vector<16x128xf32>
      %188 = arith.subf %174, %187 : vector<16x128xf32>
      %189 = arith.mulf %188, %188 : vector<16x128xf32>
      %cst_74 = arith.constant dense<0.000000e+00> : vector<16xf32>
      %190 = vector.multi_reduction <add>, %189, %cst_74 [1] : vector<16x128xf32> to vector<16xf32>
      %191 = vector.shape_cast %190 : vector<16xf32> to vector<16x1xf32>
      %cst_75 = arith.constant 1.280000e+02 : f32
      %192 = vector.broadcast %cst_75 : f32 to vector<16x1xf32>
      %193 = arith.divf %191, %192 : vector<16x1xf32>
      %194 = vector.broadcast %186 : vector<16x1xf32> to vector<16x128xf32>
      %195 = arith.subf %174, %194 : vector<16x128xf32>
      %cst_76 = arith.constant 9.99999974E-6 : f32
      %196 = vector.broadcast %cst_76 : f32 to vector<16x1xf32>
      %197 = arith.addf %193, %196 : vector<16x1xf32>
      %198 = math.rsqrt %197 : vector<16x1xf32>
      %199 = vector.broadcast %198 : vector<16x1xf32> to vector<16x128xf32>
      %200 = arith.mulf %195, %199 : vector<16x128xf32>
      %201 = vector.broadcast %181 : vector<1x128xf32> to vector<16x128xf32>
      %202 = arith.mulf %200, %201 : vector<16x128xf32>
      %203 = vector.broadcast %182 : vector<1x128xf32> to vector<16x128xf32>
      %204 = arith.addf %202, %203 : vector<16x128xf32>
      %205 = vector.shape_cast %204 : vector<16x128xf32> to vector<2x8x128xf32>
      %c0_77 = arith.constant 0 : index
      %c0_78 = arith.constant 0 : index
      %c0_79 = arith.constant 0 : index
      %206 = vector.load %arg10[%c0_77, %c0_78, %c0_79] : memref<2x8x128xf32, #tpu.memory_space<vmem>>, vector<2x8x128xf32>
      tpu.vector_store %arg10[%c0_77, %c0_78, %c0_79], %205 {strides = array<i32>} : memref<2x8x128xf32, #tpu.memory_space<vmem>>, vector<2x8x128xf32>,
    } else {
    }
    return
  }
  func.func @transform_0(%arg0: i32, %arg1: i32) -> (i32, i32, i32) {
    %c0_i32 = arith.constant 0 : i32
    %c0_i32_0 = arith.constant 0 : i32
    %c0_i32_1 = arith.constant 0 : i32
    return %arg0, %c0_i32, %c0_i32_0 : i32, i32, i32
  }
  func.func @transform_1(%arg0: i32, %arg1: i32) -> (i32, i32, i32) {
    %c0_i32 = arith.constant 0 : i32
    %c0_i32_0 = arith.constant 0 : i32
    %c0_i32_1 = arith.constant 0 : i32
    return %arg0, %c0_i32, %c0_i32_0 : i32, i32, i32
  }
  func.func @transform_2(%arg0: i32, %arg1: i32) -> (i32, i32, i32, i32) {
    %c0_i32 = arith.constant 0 : i32
    %c0_i32_0 = arith.constant 0 : i32
    %c0_i32_1 = arith.constant 0 : i32
    %c0_i32_2 = arith.constant 0 : i32
    return %arg1, %c0_i32, %c0_i32_0, %c0_i32_1 : i32, i32, i32, i32
  }
  func.func @transform_3(%arg0: i32, %arg1: i32) -> (i32, i32, i32) {
    %c0_i32 = arith.constant 0 : i32
    %c0_i32_0 = arith.constant 0 : i32
    %c0_i32_1 = arith.constant 0 : i32
    return %arg1, %c0_i32, %c0_i32_0 : i32, i32, i32
  }
  func.func @transform_4(%arg0: i32, %arg1: i32) -> (i32, i32, i32) {
    %c0_i32 = arith.constant 0 : i32
    %c0_i32_0 = arith.constant 0 : i32
    %c0_i32_1 = arith.constant 0 : i32
    return %arg1, %c0_i32, %c0_i32_0 : i32, i32, i32
  }
  func.func @transform_5(%arg0: i32, %arg1: i32) -> (i32, i32, i32) {
    %c0_i32 = arith.constant 0 : i32
    %c0_i32_0 = arith.constant 0 : i32
    %c0_i32_1 = arith.constant 0 : i32
    return %arg1, %c0_i32, %c0_i32_0 : i32, i32, i32
  }
  func.func @transform_6(%arg0: i32, %arg1: i32) -> (i32, i32, i32) {
    %c0_i32 = arith.constant 0 : i32
    %c0_i32_0 = arith.constant 0 : i32
    %c0_i32_1 = arith.constant 0 : i32
    return %arg1, %c0_i32, %c0_i32_0 : i32, i32, i32
  }
  func.func @transform_7(%arg0: i32, %arg1: i32) -> (i32, i32) {
    %c0_i32 = arith.constant 0 : i32
    %c0_i32_0 = arith.constant 0 : i32
    %c0_i32_1 = arith.constant 0 : i32
    return %c0_i32, %c0_i32_0 : i32, i32
  }
  func.func @transform_8(%arg0: i32, %arg1: i32) -> (i32, i32, i32) {
    %c0_i32 = arith.constant 0 : i32
    %c0_i32_0 = arith.constant 0 : i32
    %c0_i32_1 = arith.constant 0 : i32
    return %arg0, %c0_i32, %c0_i32_0 : i32, i32, i32
  }
}

</mosaic_0001>

<bundles_post_ra>
// kernel: transformer_forward.1
= control target key start
LH: loop header
LB: loop body
LE: loop exit
PB: predicated region body
PF: predicated region fallthrough
CT: control target
= control target key end

     0   :  { %s4198_s0 = inlined_call_operand.hbm [shape: f32[2,8,128], index: 0, kind: input, shape index: {}]   ;;  %s4199_s1 = inlined_call_operand.hbm [shape: f32[2,8,128], index: 1, kind: input, shape index: {}]   ;;  %s4200_s2 = inlined_call_operand.hbm [shape: bf16[2,4,128,128], index: 2, kind: input, shape index: {}]   ;;  %s4201_s3 = inlined_call_operand.hbm [shape: bf16[2,128,256], index: 3, kind: input, shape index: {}]   ;;  %s4202_s4 = inlined_call_operand.hbm [shape: bf16[2,256,128], index: 4, kind: input, shape index: {}]   ;;  %s4203_s5 = inlined_call_operand.hbm [shape: f32[2,16,128], index: 5, kind: input, shape index: {}]   ;;  %s4204_s6 = inlined_call_operand.vmem [shape: f32[2,1,256], index: 6, kind: input, shape index: {}]   ;;  %s4205_s7 = inlined_call_operand.vmem [shape: f32[2,128], index: 7, kind: input, shape index: {}]   ;;  %s4206_s8 = inlined_call_operand.hbm [shape: f32[2,8,128], index: 8, kind: output, shape index: {}]  }
   0x1   :  { %4226 = sst [smem:[#allocation19_spill]] %s4198_s0 }
   0x2   :  { %4227 = sst [smem:[#allocation20_spill]] %s4200_s2 }
   0x3   :  { %4228 = sst [smem:[#allocation21_spill]] %s4201_s3 }
   0x4   :  { %4229 = sst [smem:[#allocation22_spill]] %s4202_s4 }
   0x5   :  { %4230 = sst [smem:[#allocation23_spill]] %s4205_s7 }
   0x6   :  { %4231 = sst [smem:[#allocation24_spill]] %s4206_s8 }
   0x7   :  { %13 = vsyncpa [#allocation3], 0 }
   0x8   :  { %14 = vsyncpa [#allocation6], 0 }
   0x9   :  { %15 = vsyncpa [#allocation4], 0  ;;  %s3514_s27 = smov 0   ;;  %s3516_s28 = smov 0  }
   0xa   :  { %s3518_s29 = smov 0   ;;  %s3520_s30 = smov 0  }
   0xb   :  { %s3522_s9 = smov 0   ;;  %s3524_s10 = smov 0  }
   0xc LB: > { %4232 = sst [smem:[#allocation16_spill]] %s3436_s29  ;;  %s3543_s11 = sadd.s32 4294967295, %s3448_s10   ;;  %s3448_s10 = sphi %s3524_s10, %s21_s10   ;;  %s3444_s9 = sphi %s3522_s9, %s4269_s9   ;;  %s3440_s30 = sphi %s3520_s30, %s4268_s30   ;;  %s3436_s29 = sphi %s3518_s29, %s4264_s29   ;;  %s3432_s28 = sphi %s3516_s28, %s4267_s28   ;;  %s3428_s27 = sphi %s3514_s27, %s4266_s27  }
   0xd   : > { %p99_p0 = scmp.ne.s32.totalorder %s3436_s29, %s3432_s28  ;;  %p100_p1 = scmp.eq.s32.totalorder %s3448_s10, 0 }
   0xe   : > { %p105_p2 = scmp.ne.s32.totalorder %s3432_s28, %s3428_s27  ;;  %p4207_p3 = scmp.eq.s32.totalorder %s3543_s11, 0 }
   0xf   : > { %p101_p4 = por %p100_p1, %p99_p0  ;;  %p2502_p5 = scmp.ge.s32.totalorder %s3448_s10, 1 }
  0x10   : > { %p3554_p6 = por %p4207_p3, %p105_p2  ;;  %p267_p7 = scmp.lt.s32.totalorder %s3448_s10, 3 }
  0x11   : > { %s3450_s15 = smov [#allocation2]   ;;  %p2984_p10 = scmp.lt.s32.totalorder %s3448_s10, 2 }
  0x12   : > { %s4233_s13 = scalar_select %p3554_p6, 1, 0 }
  0x13   : > { %p3559_p8 = pnand %p2502_p5, %p267_p7  ;;  %s282_s16 = sshll.u32 %s3450_s15, 4  ;;  %s283_s16 = int_to_ptr.vmem [resolvable:$true] %s282_s16 }
  0x14   : > { %p3572_p12 = pnand %p2984_p10, %p101_p4  ;;  %s30_s19 = sadd.s32 1, %s3444_s9 }
  0x15   : > { %s4234_s14 = scalar_select %p3559_p8, 1, 0 }
  0x16   : > { %p2962_p9 = pneg %p3559_p8  ;;  %s4237_s0 = sld [smem:[#allocation19_spill]] }
  0x17   : > { %s4236_s18 = scalar_select %p3572_p12, 1, 0 }
  0x18   : > { %p3568_p11 = pnand %p2962_p9, %p4207_p3 }
  0x1a   : > { %s4235_s17 = scalar_select %p3568_p11, 1, 0 }
  0x1b   : > { %p4216_p0 = pneg %p3568_p11 }
  0x1c   : > { %s3184_s22 = scalar_lea.hbm %s4237_s0, 256 }
  0x1d   : > { %p3185_p13 = scmp.ne.s32.totalorder %s4237_s0, %s3184_s22  ;;  %p3191_p4 = scmp.lt.u32.totalorder %s3184_s22, %s4237_s0 }
  0x1f   : > { %p3187_p1 = pnand %p4216_p0, %p3185_p13 }
  0x21   : > { %p3188_p2 = pneg %p3187_p1 }
  0x23   : > { %p3193_p5 = pnand %p3191_p4, %p3188_p2 }
  0x25   : > { %3196 = shalt.err (!%p3193_p5)
}
  0x26   : > { %s3197_s27 = scalar_lea.vmem %s283_s16, 256  ;;  %p3205_p3 = scmp.lt.s32.totalorder %s283_s16, %s283_s16 }
  0x27   : > { %p3198_p7 = scmp.ne.s32.totalorder %s283_s16, %s3197_s27  ;;  %p3206_p6 = scmp.lt.s32.totalorder %s3197_s27, %s3197_s27 }
  0x29   : > { %p3200_p9 = pnand %p3198_p7, %p4216_p0  ;;  %p3207_p8 = por %p3206_p6, %p3205_p3 }
  0x2b   : > { %p3201_p10 = pneg %p3200_p9 }
  0x2d   : > { %p3208_p12 = pnand %p3207_p8, %p3201_p10 }
  0x2f   : > { %3211 = shalt.err (!%p3208_p12)
}
  0x30   : > { %s4212_s15 = smov 128   ;;  %s4214_s20 = smov 8  }
  0x31   : > { %2965 = dma.hbm_to_vmem [thread:$0]  (!%p3568_p11), %s4237_s0, 256, %s283_s16, [#allocation3], %s4212_s15, %s4212_s15, %s4214_s20  }
  0x32   : > { %p31_p3 = scmp.ge.s32.totalorder %s30_s19, 2  ;;  %s315_s23 = sand.u32 1, %s3448_s10  }
  0x33   : > { %s3604_s24 = sand.u32 1, %s3436_s29   ;;  %s2666_s27 = sshll.u32 %s3444_s9, 12 }
  0x34   : > { %s4271_s19 = smov (%p31_p3, %s30_s19), 0  ;;  %s2506_s25 = sshll.u32 %s3604_s24, 8 }
  0x35   : > { %4238 = sst [smem:[#allocation17_spill]] %s4271_s19  ;;  %s89_s26 = ssub.s32 %s3444_s9, %s4271_s19 }
  0x36   : > { %p90_p6 = scmp.eq.s32.totalorder %s89_s26, 0  ;;  %s4239_s2 = sld [smem:[#allocation20_spill]] }
  0x37   : > { %s319_s16 = scalar_lea.vmem [#allocation7], %s2506_s25  ;;  %s4240_s22 = sadd.s32 1, %s3436_s29 }
  0x38   : > { %s326_s21 = sshll.u32 %s319_s16, 4  ;;  %s2509_s20 = sshll.u32 %s3604_s24, 7  ;;  %s3622_s21 = int_to_ptr.vmem [resolvable:$true] %s326_s21 }
  0x39   : > { %s3620_s15 = scalar_select %p90_p6, %s3436_s29, %s4240_s22  }
  0x3a   : > { %s3625_s0 = scalar_lea.sflag [#allocation3], %s315_s23  ;;  %p4242_p12 = scmp.ne.s32.totalorder %s4236_s18, 0 }
  0x3b   : > { %4241 = sst [smem:[#allocation18_spill]] %s3620_s15 }
  0x3c   : > { %s3615_s7 = scalar_lea.hbm %s4239_s2, %s2666_s27  ;;  %p3631_p13 = pneg %p4242_p12 }
  0x3d   : > { %s3212_s26 = scalar_lea.hbm %s3615_s7, 4096  ;;  %s3217_s27 = scalar_lea.hbm %s4239_s2, 8192 }
  0x3e   : > { %p3213_p8 = scmp.ne.s32.totalorder %s3615_s7, %s3212_s26  ;;  %p3218_p4 = scmp.lt.u32.totalorder %s3615_s7, %s4239_s2 }
  0x3f   : > { %s4243_s8 = scalar_select %p3631_p13, 1, 0 }
  0x40   : > { %p3215_p1 = pnand %p3631_p13, %p3213_p8  ;;  %p3219_p5 = scmp.lt.u32.totalorder %s3217_s27, %s3212_s26 }
  0x41   : > { %p3221_p9 = scmp.lt.u32.totalorder %s3212_s26, %s3615_s7 }
  0x42   : > { %p3216_p2 = pneg %p3215_p1  ;;  %p3220_p7 = por %p3219_p5, %p3218_p4 }
  0x44   : > { %p3222_p10 = por %p3221_p9, %p3220_p7 }
  0x46   : > { %p3223_p3 = pnand %p3222_p10, %p3216_p2 }
  0x48   : > { %3226 = shalt.err (!%p3223_p3)
}
  0x49   : > { %s3227_s23 = scalar_lea.vmem %s3622_s21, 4096  ;;  %s3453_s12 = smov [#allocation7]  }
  0x4a   : > { %p3228_p6 = scmp.ne.s32.totalorder %s3622_s21, %s3227_s23  ;;  %s3232_s25 = sshll.u32 %s3453_s12, 4  ;;  %s3233_s25 = int_to_ptr.vmem [resolvable:$false] %s3232_s25 }
  0x4b   : > { %s3234_s16 = scalar_lea.vmem %s3233_s25, 8192  ;;  %p3235_p0 = scmp.lt.s32.totalorder %s3622_s21, %s3233_s25 }
  0x4c   : > { %p3230_p8 = pnand %p3228_p6, %p3631_p13  ;;  %p3236_p11 = scmp.lt.s32.totalorder %s3234_s16, %s3227_s23 }
  0x4e   : > { %p3231_p1 = pneg %p3230_p8  ;;  %p3237_p4 = por %p3236_p11, %p3235_p0 }
  0x50   : > { %p3238_p5 = pnand %p3237_p4, %p3231_p1 }
  0x52   : > { %3241 = shalt.err (!%p3238_p5)
}
  0x53   : > { %s4220_s26 = smov 64   ;;  %s4221_s27 = smov 4  }
  0x54   : > { %2972 = dma.hbm_to_vmem [thread:$0]  (!%p4242_p12), %s3615_s7, 4096, %s3622_s21, %s3625_s0, %s4220_s26, %s4220_s26, %s4221_s27  }
  0x55   : > { %s2667_s22 = sshll.u32 %s3444_s9, 11  ;;  %s4244_s3 = sld [smem:[#allocation21_spill]] }
  0x56   : > { %s340_s16 = scalar_lea.vmem [#allocation8], %s2509_s20 }
  0x57   : > { %s347_s2 = sshll.u32 %s340_s16, 4  ;;  %s3668_s2 = int_to_ptr.vmem [resolvable:$true] %s347_s2 }
  0x5b   : > { %s3664_s25 = scalar_lea.hbm %s4244_s3, %s2667_s22  ;;  %s3247_s23 = scalar_lea.hbm %s4244_s3, 4096 }
  0x5c   : > { %s3242_s19 = scalar_lea.hbm %s3664_s25, 2048  ;;  %p3248_p7 = scmp.lt.u32.totalorder %s3664_s25, %s4244_s3 }
  0x5d   : > { %p3243_p11 = scmp.ne.s32.totalorder %s3664_s25, %s3242_s19  ;;  %p3249_p9 = scmp.lt.u32.totalorder %s3247_s23, %s3242_s19 }
  0x5e   : > { %p3251_p3 = scmp.lt.u32.totalorder %s3242_s19, %s3664_s25 }
  0x5f   : > { %p3245_p0 = pnand %p3243_p11, %p3631_p13  ;;  %p3250_p10 = por %p3249_p9, %p3248_p7 }
  0x61   : > { %p3246_p2 = pneg %p3245_p0  ;;  %p3252_p6 = por %p3251_p3, %p3250_p10 }
  0x63   : > { %p3253_p8 = pnand %p3252_p6, %p3246_p2 }
  0x65   : > { %3256 = shalt.err (!%p3253_p8)
}
  0x66   : > { %s3257_s16 = scalar_lea.vmem %s3668_s2, 2048  ;;  %s3456_s7 = smov [#allocation8]  }
  0x67   : > { %p3258_p1 = scmp.ne.s32.totalorder %s3668_s2, %s3257_s16  ;;  %s3262_s21 = sshll.u32 %s3456_s7, 4  ;;  %s3263_s21 = int_to_ptr.vmem [resolvable:$false] %s3262_s21 }
  0x68   : > { %s3264_s26 = scalar_lea.vmem %s3263_s21, 4096  ;;  %p3265_p11 = scmp.lt.s32.totalorder %s3668_s2, %s3263_s21 }
  0x69   : > { %p3260_p4 = pnand %p3258_p1, %p3631_p13  ;;  %p3266_p0 = scmp.lt.s32.totalorder %s3264_s26, %s3257_s16 }
  0x6b   : > { %p3261_p5 = pneg %p3260_p4  ;;  %p3267_p7 = por %p3266_p0, %p3265_p11 }
  0x6d   : > { %p3268_p9 = pnand %p3267_p7, %p3261_p5 }
  0x6f   : > { %3271 = shalt.err (!%p3268_p9)
}
  0x70   : > { %s4245_s19 = smov 8   ;;  %s4246_s23 = smov 128  }
  0x71   : > { %2975 = dma.hbm_to_vmem [thread:$0]  (!%p4242_p12), %s3664_s25, 2048, %s3668_s2, %s3625_s0, %s4246_s23, %s4246_s23, %s4245_s19  }
  0x72   : > { %s4247_s4 = sld [smem:[#allocation22_spill]]  ;;  %s361_s21 = scalar_lea.vmem [#allocation9], %s2509_s20 }
  0x73   : > { %s368_s26 = sshll.u32 %s361_s21, 4  ;;  %s3704_s26 = int_to_ptr.vmem [resolvable:$true] %s368_s26 }
  0x78   : > { %s3700_s16 = scalar_lea.hbm %s4247_s4, %s2667_s22  ;;  %s3277_s12 = scalar_lea.hbm %s4247_s4, 4096 }
  0x79   : > { %s3272_s27 = scalar_lea.hbm %s3700_s16, 2048  ;;  %p3278_p6 = scmp.lt.u32.totalorder %s3700_s16, %s4247_s4 }
  0x7a   : > { %p3273_p2 = scmp.ne.s32.totalorder %s3700_s16, %s3272_s27  ;;  %p3279_p8 = scmp.lt.u32.totalorder %s3277_s12, %s3272_s27 }
  0x7b   : > { %p3281_p4 = scmp.lt.u32.totalorder %s3272_s27, %s3700_s16 }
  0x7c   : > { %p3275_p10 = pnand %p3273_p2, %p3631_p13  ;;  %p3280_p1 = por %p3279_p8, %p3278_p6 }
  0x7e   : > { %p3276_p3 = pneg %p3275_p10  ;;  %p3282_p5 = por %p3281_p4, %p3280_p1 }
  0x80   : > { %p3283_p11 = pnand %p3282_p5, %p3276_p3 }
  0x82   : > { %3286 = shalt.err (!%p3283_p11)
}
  0x83   : > { %s3287_s20 = scalar_lea.vmem %s3704_s26, 2048  ;;  %s3457_s21 = smov [#allocation9]  }
  0x84   : > { %p3288_p0 = scmp.ne.s32.totalorder %s3704_s26, %s3287_s20  ;;  %s3292_s2 = sshll.u32 %s3457_s21, 4  ;;  %s3293_s2 = int_to_ptr.vmem [resolvable:$false] %s3292_s2 }
  0x85   : > { %s3294_s25 = scalar_lea.vmem %s3293_s2, 4096  ;;  %p3295_p2 = scmp.lt.s32.totalorder %s3704_s26, %s3293_s2 }
  0x86   : > { %p3290_p7 = pnand %p3288_p0, %p3631_p13  ;;  %p3296_p10 = scmp.lt.s32.totalorder %s3294_s25, %s3287_s20 }
  0x88   : > { %p3291_p9 = pneg %p3290_p7  ;;  %p3297_p6 = por %p3296_p10, %p3295_p2 }
  0x8a   : > { %p3298_p8 = pnand %p3297_p6, %p3291_p9 }
  0x8c   : > { %3301 = shalt.err (!%p3298_p8)
}
  0x8d   : > { %s4248_s27 = smov 4   ;;  %s4249_s12 = smov 64  }
  0x8e   : > { %2978 = dma.hbm_to_vmem [thread:$0]  (!%p4242_p12), %s3700_s16, 2048, %s3704_s26, %s3625_s0, %s4249_s12, %s4249_s12, %s4248_s27  }
  0x8f   : > { %s3458_s22 = smov [#allocation5]   ;;  %s2515_s21 = sshll.u32 %s3604_s24, 4 }
  0x90   : > { %s298_s7 = sshll.u32 %s3458_s22, 4  ;;  %s3302_s25 = scalar_lea.hbm %s4199_s1, 256  ;;  %s299_s7 = int_to_ptr.vmem [resolvable:$true] %s298_s7 }
  0x91   : > { %p3303_p3 = scmp.ne.s32.totalorder %s4199_s1, %s3302_s25  ;;  %p4250_p1 = scmp.ne.s32.totalorder %s4235_s17, 0 }
  0x92   : > { %p3309_p0 = scmp.lt.u32.totalorder %s3302_s25, %s4199_s1 }
  0x93   : > { %p4251_p4 = pneg %p4250_p1 }
  0x95   : > { %p3305_p5 = pnand %p3303_p3, %p4251_p4 }
  0x97   : > { %p3306_p11 = pneg %p3305_p5 }
  0x99   : > { %p3311_p7 = pnand %p3309_p0, %p3306_p11 }
  0x9b   : > { %3314 = shalt.err (!%p3311_p7)
}
  0x9c   : > { %s3315_s24 = scalar_lea.vmem %s299_s7, 256  ;;  %p4252_p2 = pmov %p4251_p4 }
  0x9d   : > { %p3316_p9 = scmp.ne.s32.totalorder %s299_s7, %s3315_s24  ;;  %p3323_p8 = scmp.lt.s32.totalorder %s299_s7, %s299_s7 }
  0x9e   : > { %p3324_p12 = scmp.lt.s32.totalorder %s3315_s24, %s3315_s24 }
  0x9f   : > { %p3318_p10 = pnand %p3316_p9, %p4252_p2 }
  0xa0   : > { %p3325_p13 = por %p3324_p12, %p3323_p8 }
  0xa1   : > { %p3319_p6 = pneg %p3318_p10 }
  0xa3   : > { %p3326_p3 = pnand %p3325_p13, %p3319_p6 }
  0xa5   : > { %3329 = shalt.err (!%p3326_p3)
}
  0xa6   : > { %2968 = dma.hbm_to_vmem [thread:$0]  (!%p4250_p1), %s4199_s1, 256, %s299_s7, [#allocation6], %s4246_s23, %s4246_s23, %s4245_s19  }
  0xa7   : > { %s2669_s29 = sshll.u32 %s3444_s9, 8  ;;  %s382_s15 = scalar_lea.vmem [#allocation10], %s2515_s21 }
  0xa8   : > { %s389_s16 = sshll.u32 %s382_s15, 4  ;;  %s3759_s12 = scalar_lea.hbm %s4203_s5, %s2669_s29  ;;  %s3761_s16 = int_to_ptr.vmem [resolvable:$true] %s389_s16 }
  0xa9   : > { %s3330_s17 = scalar_lea.hbm %s3759_s12, 256  ;;  %p4253_p13 = scmp.ne.s32.totalorder %s4243_s8, 0 }
  0xaa   : > { %p3331_p12 = scmp.ne.s32.totalorder %s3759_s12, %s3330_s17  ;;  %s3335_s21 = scalar_lea.hbm %s4203_s5, 512 }
  0xab   : > { %p3336_p1 = scmp.lt.u32.totalorder %s3759_s12, %s4203_s5  ;;  %p3337_p11 = scmp.lt.u32.totalorder %s3335_s21, %s3330_s17 }
  0xac   : > { %p3333_p4 = pnand %p3331_p12, %p4253_p13  ;;  %p3339_p7 = scmp.lt.u32.totalorder %s3330_s17, %s3759_s12 }
  0xad   : > { %p3338_p0 = por %p3337_p11, %p3336_p1 }
  0xae   : > { %p3334_p5 = pneg %p3333_p4 }
  0xaf   : > { %p3340_p9 = por %p3339_p7, %p3338_p0 }
  0xb1   : > { %p3341_p2 = pnand %p3340_p9, %p3334_p5 }
  0xb3   : > { %3344 = shalt.err (!%p3341_p2)
}
  0xb4   : > { %s3345_s25 = scalar_lea.vmem %s3761_s16, 256  ;;  %s3459_s24 = smov [#allocation10]  }
  0xb5   : > { %p3346_p10 = scmp.ne.s32.totalorder %s3761_s16, %s3345_s25  ;;  %s3350_s3 = sshll.u32 %s3459_s24, 4  ;;  %s3351_s3 = int_to_ptr.vmem [resolvable:$false] %s3350_s3 }
  0xb6   : > { %s3352_s4 = scalar_lea.vmem %s3351_s3, 512  ;;  %p3353_p3 = scmp.lt.s32.totalorder %s3761_s16, %s3351_s3 }
  0xb7   : > { %p3348_p6 = pnand %p3346_p10, %p4253_p13  ;;  %p3354_p12 = scmp.lt.s32.totalorder %s3352_s4, %s3345_s25 }
  0xb9   : > { %p3349_p8 = pneg %p3348_p6  ;;  %p3355_p4 = por %p3354_p12, %p3353_p3 }
  0xbb   : > { %p3356_p1 = pnand %p3355_p4, %p3349_p8 }
  0xbd   : > { %3359 = shalt.err (!%p3356_p1)
}
  0xbe   : > { %p4254_p5 = scmp.ne.s32.totalorder %s4236_s18, 0  ;;  %p4255_p13 = scmp.ne.s32.totalorder %s4234_s14, 0 }
  0xbf   : > { %p4256_p11 = scmp.eq.s32.totalorder (!%p4255_p13), %s3543_s11, 0 }
  0xc0   : > { %2981 = dma.hbm_to_vmem [thread:$0]  (!%p4254_p5), %s3759_s12, 256, %s3761_s16, %s3625_s0, %s4246_s23, %s4246_s23, %s4245_s19  }
  0xc1   : > { %408 = sbr.rel (%p4255_p13) target bundleno = 4604 (0x11fc), region = 52 }
  0xc8   : > { %3411 = dma.done.wait (%p4256_p11), [#allocation3], 256   ;;  %p4257_p0 = pmov %p4256_p11 }
  0xca   : > { %3413 = vsyncadd (%p4257_p0), [#allocation3], 4294967040  ;;  %p4258_p7 = pmov %p4257_p0 }
  0xcb   : > { %p4259_p9 = pmov %p4257_p0 }
  0xcc   : > { %3415 = dma.done.wait (%p4258_p7), [#allocation6], 256  }
  0xcd   : > { %3417 = vsyncadd (%p4259_p9), [#allocation6], 4294967040  ;;  %s418_s18 = sand.u32 1, %s3543_s11   ;;  %s420_s0 = sand.u32 1, %s3432_s28  }
  0xce   : > { %s2521_s8 = sshll.u32 %s420_s0, 8  ;;  %s419_s14 = scalar_lea.sflag [#allocation3], %s418_s18 }
  0xcf   : > { %s3800_s19 = scalar_lea.vmem [#allocation7], %s2521_s8  ;;  %p4260_p2 = scmp.ne.s32.totalorder %s4233_s13, 0 }
  0xd1   : > { %3419 = dma.done.wait (%p4260_p2), %s419_s14, 8448  }
  0xd2   : > { %3421 = vsyncadd (%p4260_p2), %s419_s14, 4294958848  ;;  %s2522_s23 = sshll.u32 %s420_s0, 7  ;;  %s2524_s29 = sshll.u32 %s420_s0, 4 }
  0xd3   : > { %p498_p10 = scmp.lt.s32.totalorder %s3440_s30, 1  ;;  %s3813_s17 = scalar_lea.vmem [#allocation8], %s2522_s23 }
  0xd4   : > { %s3815_s22 = scalar_lea.vmem [#allocation9], %s2522_s23  ;;  %s3817_s7 = scalar_lea.vmem [#allocation10], %s2524_s29 }
  0xd5   : > { %s499_s15 = scalar_select %p498_p10, %s3440_s30, 1 }
  0xd6   : > { %p2526_p6 = scmp.ne.s32.totalorder %s3440_s30, 0 }
  0xd7   : > { %s2525_s16 = sshll.u32 %s499_s15, 1  ;;  %v508_v0 = vld [vmem:[#allocation2] sm:$0xff] (!%p2526_p6)  ;;  %v509_v1 = vld [vmem:[#allocation2 + $0x8] sm:$0xff] (!%p2526_p6) }
  0xd8   : > { %s3811_s12 = scalar_lea.vmem %s4204_s6, %s2525_s16  ;;  %507 = sbr.rel (%p2526_p6) target bundleno = 223 (0xdf), region = 80  ;;  %510 = vst [vmem:[#allocation11] sm:$0xff] (!%p2526_p6), %v508_v0  ;;  %511 = vst [vmem:[#allocation11 + $0x8] sm:$0xff] (!%p2526_p6), %v509_v1 }
  0xdf PF: > { %v3067_v2 = vld [vmem:[%s3800_s19 + $0x40] sm:$0xff]   ;;  %v3460_v3 = vmov 0.0   ;;  %v3068_v4 = vld [vmem:[%s3800_s19 + $0x48] sm:$0xff]   ;;  %vm3461_vm0 = vmmov 0   ;;  %v3070_v7 = vld [vmem:[%s3800_s19 + $0x50] sm:$0xff]   ;;  %v591_v29 = vlaneseq  ;;  %vm890_vm1 = vcmask 261120  }
  0xe0   : > { %2786 = vmatprep.subr.bf16.mxu1 %v3460_v3  ;;  %2766 = vmatprep.subr.bf16.mxu0 %v3460_v3  ;;  %v3069_v5 = vld [vmem:[%s3800_s19] sm:$0xff]   ;;  %v3071_v6 = vld [vmem:[%s3800_s19 + $0x8] sm:$0xff]   ;;  %v3073_v8 = vld [vmem:[%s3800_s19 + $0x10] sm:$0xff]   ;;  %vm983_vm2 = vcmask 64512   ;;  %s3462_s13 = smov 96   ;;  %vm1011_vm3 = vcmask 1043456  }
  0xe1   : > { %2787 = vmatpush3.bf16.msra.mxu1 %v3067_v2  ;;  %2802 = vmatprep.mubr.msk.bf16.mxu1 %vm3461_vm0, %v3460_v3  ;;  %v3072_v9 = vld [vmem:[%s3800_s19 + $0x58] sm:$0xff]   ;;  %v3074_v11 = vld [vmem:[%s3800_s19 + $0x60] sm:$0xff]   ;;  %v3076_v13 = vld [vmem:[%s3800_s19 + $0x68] sm:$0xff]   ;;  %v3874_v30 = vshrl.u32 %v591_v29, 7  ;;  %s3463_s21 = smov 64   ;;  %s3464_s2 = smov 32  }
  0xe2   : > { %2788 = vmatprep.subr.bf16.mxu1 %v3460_v3  ;;  %2782 = vmatprep.mubr.msk.bf16.mxu0 %vm3461_vm0, %v3460_v3  ;;  %v3075_v10 = vld [vmem:[%s3800_s19 + $0x18] sm:$0xff]   ;;  %v3077_v12 = vld [vmem:[%s3800_s19 + $0x20] sm:$0xff]   ;;  %v3079_v14 = vld [vmem:[%s3800_s19 + $0x28] sm:$0xff]   ;;  %vm1787_vm4 = vcmask 523264   ;;  %vm1790_vm5 = vcmask 785408   ;;  %p2661_p8 = scmp.ne.s32.totalorder %s3440_s30, 1 }
  0xe3   : > { %2767 = vmatpush3.bf16.msra.mxu0 %v3069_v5  ;;  %v3078_v15 = vld [vmem:[%s3800_s19 + $0x70] sm:$0xff]   ;;  %v3848_v16 = vld [vmem:[#allocation2] sm:$0xff]  ;;  %v3850_v17 = vld [vmem:[#allocation2 + $0x8] sm:$0xff]  ;;  %v3877_v31 = vsub.s32 1, %v3874_v30  ;;  %v3885_v34 = vsub.s32 0, %v3874_v30  ;;  %s4261_s25 = sld [smem:[#allocation23_spill]] (!%p2661_p8) }
  0xe4   : > { %2768 = vmatprep.subr.bf16.mxu0 %v3460_v3  ;;  %v516_v18 = vld [vmem:[#allocation5] sm:$0xff]  ;;  %v517_v19 = vld [vmem:[#allocation5 + $0x8] sm:$0xff]  ;;  %v3860_v25 = vld [vmem:[#allocation11] sm:$0xff]  ;;  %v790_v62 = vpack.c.bf16 %v3850_v17, %v3848_v16 }
  0xe5   : > { %2789 = vmatpush3.bf16.msra.mxu1 %v3068_v4  ;;  %v3081_v20 = vld [vmem:[%s3800_s19 + $0x30] sm:$0xff]   ;;  %v3080_v21 = vld [vmem:[%s3800_s19 + $0x78] sm:$0xff]   ;;  %v518_v22 = vadd.f32 %v516_v18, %v3848_v16  ;;  %v519_v23 = vadd.f32 %v517_v19, %v3850_v17  ;;  %v3862_v26 = vld [vmem:[#allocation11 + $0x8] sm:$0xff] }
  0xe6   : > { %2790 = vmatprep.subr.bf16.mxu1 %v3460_v3  ;;  %v3082_v24 = vld [vmem:[%s3800_s19 + $0x38] sm:$0xff]   ;;  %v590_v28 = vpack.c.bf16 %v3862_v26, %v3860_v25  ;;  %v3880_v32 = vld [vmem:[%s3817_s7] sm:$0xff]  ;;  %v3084_v55 = vld [vmem:[%s3800_s19 + $0x88] sm:$0xff]  }
  0xe7   : > { %2769 = vmatpush3.bf16.msra.mxu0 %v3071_v6  ;;  %v690_v27 = vpack.c.bf16 %v519_v23, %v518_v22  ;;  %v694_v33 = vrot.slane %v3880_v32, %v3877_v31  ;;  %v594_v38 = vrot.slane %v3880_v32, %v3885_v34  ;;  %v3083_v54 = vld [vmem:[%s3800_s19 + $0x80] sm:$0xff]   ;;  %v3085_v56 = vld [vmem:[%s3800_s19 + $0x90] sm:$0xff]   ;;  %v3086_v57 = vld [vmem:[%s3800_s19 + $0x98] sm:$0xff]  }
  0xe8   : > { %2770 = vmatprep.subr.bf16.mxu0 %v3460_v3  ;;  %v3087_v58 = vld [vmem:[%s3800_s19 + $0xa0] sm:$0xff]   ;;  %v3088_v59 = vld [vmem:[%s3800_s19 + $0xa8] sm:$0xff]   ;;  %v3089_v60 = vld [vmem:[%s3800_s19 + $0xb0] sm:$0xff]  }
  0xe9   : > { %2791 = vmatpush3.bf16.msra.mxu1 %v3070_v7  ;;  %v3090_v61 = vld [vmem:[%s3800_s19 + $0xb8] sm:$0xff]  }
  0xea   : > { %2792 = vmatprep.subr.bf16.mxu1 %v3460_v3 }
  0xeb   : > { %2771 = vmatpush3.bf16.msra.mxu0 %v3073_v8 }
  0xec   : > { %2772 = vmatprep.subr.bf16.mxu0 %v3460_v3 }
  0xed   : > { %2793 = vmatpush3.bf16.msra.mxu1 %v3072_v9 }
  0xee   : > { %2794 = vmatprep.subr.bf16.mxu1 %v3460_v3 }
  0xef   : > { %2773 = vmatpush3.bf16.msra.mxu0 %v3075_v10 }
  0xf0   : > { %2774 = vmatprep.subr.bf16.mxu0 %v3460_v3 }
  0xf1   : > { %2795 = vmatpush3.bf16.msra.mxu1 %v3074_v11 }
  0xf2   : > { %2796 = vmatprep.subr.bf16.mxu1 %v3460_v3 }
  0xf3   : > { %2775 = vmatpush3.bf16.msra.mxu0 %v3077_v12 }
  0xf4   : > { %2776 = vmatprep.subr.bf16.mxu0 %v3460_v3 }
  0xf5   : > { %2797 = vmatpush3.bf16.msra.mxu1 %v3076_v13 }
  0xf6   : > { %2798 = vmatprep.subr.bf16.mxu1 %v3460_v3 }
  0xf7   : > { %2777 = vmatpush3.bf16.msra.mxu0 %v3079_v14 }
  0xf8   : > { %2778 = vmatprep.subr.bf16.mxu0 %v3460_v3 }
  0xf9   : > { %2799 = vmatpush3.bf16.msra.mxu1 %v3078_v15 }
  0xfa   : > { %2800 = vmatprep.subr.bf16.mxu1 %v3460_v3 }
  0xfb   : > { %2779 = vmatpush3.bf16.msra.mxu0 %v3081_v20  ;;  %v793_v20 = vsub.s32 2, %v3874_v30 }
  0xfc   : > { %2780 = vmatprep.subr.bf16.mxu0 %v3460_v3 }
  0xfd   : > { %2801 = vmatpush3.bf16.msra.mxu1 %v3080_v21  ;;  %v794_v23 = vrot.slane %v3880_v32, %v793_v20 }
  0xfe   : > { %2826 = vmatprep.subr.bf16.mxu1 %v3460_v3 }
  0xff   : > { %2781 = vmatpush3.bf16.msra.mxu0 %v3082_v24 }
 0x100   : > { %2803 = vmatmul.mubr.bf16.vlgmr.msra.gmra.mrb[0].mxu1 %v690_v27  ;;  %2806 = vmatprep.subr.bf16.mxu0 %v3460_v3 }
 0x101   : > { %2828 = vmatprep.mubr.msk.bf16.mxu1 %vm3461_vm0, %v3460_v3 }
 0x102   : > { %2783 = vmatmul.mubr.bf16.vlgmr.msra.gmra.mrb[0].mxu0 %v590_v28 }
 0x103   : > { %2822 = vmatprep.mubr.msk.bf16.mxu0 %vm3461_vm0, %v3460_v3  ;;  %2807 = vmatpush3.bf16.msra.mxu0 %v3083_v54 }
 0x104   : > { %2808 = vmatprep.subr.bf16.mxu0 %v3460_v3 }
 0x107   : > { %2809 = vmatpush3.bf16.msra.mxu0 %v3084_v55 }
 0x108   : > { %2810 = vmatprep.subr.bf16.mxu0 %v3460_v3 }
 0x10b   : > { %2811 = vmatpush3.bf16.msra.mxu0 %v3085_v56 }
 0x10c   : > { %2812 = vmatprep.subr.bf16.mxu0 %v3460_v3 }
 0x10f   : > { %2813 = vmatpush3.bf16.msra.mxu0 %v3086_v57 }
 0x110   : > { %2814 = vmatprep.subr.bf16.mxu0 %v3460_v3 }
 0x113   : > { %2815 = vmatpush3.bf16.msra.mxu0 %v3087_v58 }
 0x114   : > { %2816 = vmatprep.subr.bf16.mxu0 %v3460_v3 }
 0x117   : > { %2817 = vmatpush3.bf16.msra.mxu0 %v3088_v59 }
 0x118   : > { %2818 = vmatprep.subr.bf16.mxu0 %v3460_v3 }
 0x11b   : > { %2819 = vmatpush3.bf16.msra.mxu0 %v3089_v60 }
 0x11c   : > { %2820 = vmatprep.subr.bf16.mxu0 %v3460_v3 }
 0x11f   : > { %2821 = vmatpush3.bf16.msra.mxu0 %v3090_v61 }
 0x120   : > { %2874 = vmatprep.subr.bf16.mxu0 %v3460_v3 }
 0x122   : > { %2823 = vmatmul.mubr.bf16.vlgmr.msra.gmra.mrb[4].mxu0 %v790_v62 }
 0x123   : > { %2876 = vmatprep.mubr.msk.bf16.mxu0 %vm3461_vm0, %v3460_v3 }
 0x1d3   : > { %v777_v35 = vpop.f32.mrb[0].mxu1 }
 0x1d4   : > { %v778_v36 = vadd.f32 %v777_v35, %v694_v33  ;;  %v2804_v37 = vpop.f32.mrb[1].mxu1 }
 0x1d5   : > { %v780_v39 = vpop.f32.mrb[2].mxu1  ;;  %v677_v40 = vpop.f32.mrb[0].mxu0 }
 0x1d6   : > { %v3889_v41 = vpack.c.bf16 %v778_v36, %v778_v36  ;;  %v2805_v42 = vpop.f32.mrb[3].mxu1  ;;  %v2784_v43 = vpop.f32.mrb[1].mxu0  ;;  %v781_v45 = vadd.f32 %v780_v39, %v694_v33  ;;  %v678_v46 = vadd.f32 %v677_v40, %v594_v38 }
 0x1d7   : > { %v680_v44 = vpop.f32.mrb[2].mxu0 }
 0x1d8   : > { %v895_v47 = vsel %vm890_vm1, %v3889_v41, 0  ;;  %v2785_v48 = vpop.f32.mrb[3].mxu0  ;;  %v3894_v49 = vpack.c.bf16 %v781_v45, %v781_v45  ;;  %v3896_v50 = vpack.c.bf16 %v678_v46, %v678_v46  ;;  %v681_v52 = vadd.f32 %v680_v44, %v594_v38 }
 0x1d9   : > { %2827 = vmatpush3.bf16.xpose.msra.mxu1 %v895_v47 }
 0x1da   : > { %2832 = vmatprep.subr.bf16.mxu1 %v3460_v3  ;;  %v941_v51 = vsel %vm890_vm1, %v3894_v49, 0  ;;  %v3905_v53 = vpack.c.bf16 %v681_v52, %v681_v52 }
 0x1e0   : > { %2829 = vmatmul.mubr.msk.bf16.vlgmr.msra.gmra.mrb[4].mxu1 %vm890_vm1, %v3896_v50 }
 0x1e1   : > { %2833 = vmatpush3.bf16.xpose.msra.mxu1 %v941_v51  ;;  %2834 = vmatprep.mubr.msk.bf16.mxu1 %vm3461_vm0, %v3460_v3 }
 0x1e2   : > { %2838 = vmatprep.subr.bf16.mxu1 %v3460_v3 }
 0x1e8   : > { %2835 = vmatmul.mubr.msk.bf16.vlgmr.msra.gmra.mrb[8].mxu1 %vm890_vm1, %v3905_v53 }
 0x1e9   : > { %2840 = vmatprep.mubr.msk.bf16.mxu1 %vm3461_vm0, %v3460_v3 }
 0x1f5   : > { %v877_v21 = vpop.f32.mrb[4].mxu0 }
 0x1f6   : > { %v2824_v22 = vpop.f32.mrb[5].mxu0  ;;  %v878_v28 = vadd.f32 %v877_v21, %v794_v23 }
 0x1f7   : > { %v880_v24 = vpop.f32.mrb[6].mxu0 }
 0x1f8   : > { %v2825_v27 = vpop.f32.mrb[7].mxu0  ;;  %v881_v29 = vadd.f32 %v880_v24, %v794_v23  ;;  %v3939_v33 = vpack.c.bf16 %v878_v28, %v878_v28 }
 0x1fa   : > { %v1013_v35 = vsel %vm1011_vm3, %v3939_v33, 0  ;;  %v3950_v40 = vpack.c.bf16 %v881_v29, %v881_v29 }
 0x1fb   : > { %2839 = vmatpush3.bf16.msra.mxu1 %v1013_v35 }
 0x1fc   : > { %2844 = vmatprep.subr.bf16.mxu1 %v3460_v3  ;;  %v1059_v43 = vsel %vm1011_vm3, %v3950_v40, 0 }
 0x2b3   : > { %v931_v63 = vpop.f32.mrb[4].mxu1 }
 0x2b4   : > { %v2830_v0 = vpop.f32.mrb[5].mxu1  ;;  %v984_v1 = vsel %vm983_vm2, %v931_v63, -inf }
 0x2b5   : > { %985 = vmax.xlane.f32.xlu0 %v984_v1  ;;  %v934_v2 = vpop.f32.mrb[6].mxu1 }
 0x2b6   : > { %v2831_v4 = vpop.f32.mrb[7].mxu1 }
 0x2bb   : > { %v977_v5 = vpop.f32.mrb[8].mxu1 }
 0x2bc   : > { %v2836_v6 = vpop.f32.mrb[9].mxu1  ;;  %v987_v7 = vsel %vm983_vm2, %v977_v5, -inf }
 0x2bd   : > { %988 = vmax.xlane.f32.xlu0 %v987_v7  ;;  %v980_v8 = vpop.f32.mrb[10].mxu1 }
 0x2be   : > { %v2837_v9 = vpop.f32.mrb[11].mxu1 }
 0x2d3   : > { %1103 = vrot.lane.b32.xlu0 %v3889_v41, %s3462_s13 }
 0x342   : > { %v986_v10 = vpop.xlane.xlu0 %985 }
 0x343   : > { %v990_v11 = vsub.f32 %v931_v63, %v986_v10 }
 0x345   : > { %v992_v12 = vmul.f32 1.442695, %v990_v11 }
 0x347   : > { %3139 = vpow2.f32 %v992_v12 }
 0x34a   : > { %v989_v13 = vpop.xlane.xlu0 %988 }
 0x34b   : > { %v991_v14 = vsub.f32 %v977_v5, %v989_v13 }
 0x34d   : > { %v994_v15 = vmul.f32 1.442695, %v991_v14 }
 0x34e   : > { %v1104_v46 = vpop.permute.xlu0 %1103 }
 0x34f   : > { %3141 = vpow2.f32 %v994_v15  ;;  %v1109_v51 = vsel %vm890_vm1, %v1104_v46, 0 }
 0x351   : > { %v3140_v16 = vpop.eup %3139 }
 0x352   : > { %v996_v17 = vsel %vm983_vm2, %v3140_v16, 0.0 }
 0x353   : > { %997 = vadd.xlane.f32.xlu1 %v996_v17 }
 0x359   : > { %v3142_v18 = vpop.eup %3141 }
 0x35a   : > { %v999_v19 = vsel %vm983_vm2, %v3142_v18, 0.0 }
 0x35b   : > { %1000 = vadd.xlane.f32.xlu1 %v999_v19 }
 0x36c   : > { %1101 = vrot.lane.b32.xlu1 %v3896_v50, %s3462_s13 }
 0x370   : > { %1153 = vrot.lane.b32.xlu1 %v3894_v49, %s3462_s13 }
 0x374   : > { %1151 = vrot.lane.b32.xlu1 %v3905_v53, %s3462_s13 }
 0x3e0   : > { %v998_v36 = vpop.xlane.xlu1 %997 }
 0x3e1   : > { %3143 = vrcp.f32 %v998_v36 }
 0x3e8   : > { %v1001_v37 = vpop.xlane.xlu1 %1000 }
 0x3e9   : > { %3145 = vrcp.f32 %v1001_v37 }
 0x3eb   : > { %v3144_v38 = vpop.eup %3143 }
 0x3ec   : > { %v1003_v39 = vmul.f32 %v3144_v38, %v3140_v16  ;;  %v1102_v48 = vpop.permute.xlu1 %1101 }
 0x3ee   : > { %v1006_v42 = vpack.c.bf16 %v1003_v39, %v1003_v39 }
 0x3f0   : > { %2841 = vmatmul.mubr.msk.bf16.vlgmr.msra.gmra.mrb[12].mxu1 %vm983_vm2, %v1006_v42  ;;  %v1154_v52 = vpop.permute.xlu1 %1153 }
 0x3f1   : > { %2845 = vmatpush3.bf16.msra.mxu1 %v1059_v43  ;;  %2846 = vmatprep.mubr.msk.bf16.mxu1 %vm3461_vm0, %v3460_v3  ;;  %v1159_v54 = vsel %vm890_vm1, %v1154_v52, 0 }
 0x3f2   : > { %2850 = vmatprep.subr.bf16.mxu1 %v3460_v3 }
 0x3f3   : > { %v3146_v44 = vpop.eup %3145 }
 0x3f4   : > { %v1005_v45 = vmul.f32 %v3146_v44, %v3142_v18  ;;  %v1152_v55 = vpop.permute.xlu1 %1151 }
 0x3f6   : > { %v1007_v47 = vpack.c.bf16 %v1005_v45, %v1005_v45 }
 0x3f8   : > { %2847 = vmatmul.mubr.msk.bf16.vlgmr.msra.gmra.mrb[16].mxu1 %vm983_vm2, %v1007_v47 }
 0x3f9   : > { %2852 = vmatprep.mubr.msk.bf16.mxu1 %vm3461_vm0, %v3460_v3 }
 0x3fa   : > { %2851 = vmatpush3.bf16.xpose.msra.mxu1 %v1109_v51 }
 0x3fb   : > { %2856 = vmatprep.subr.bf16.mxu1 %v3460_v3 }
 0x401   : > { %2853 = vmatmul.mubr.msk.bf16.vlgmr.msra.gmra.mrb[20].mxu1 %vm890_vm1, %v1102_v48 }
 0x402   : > { %2857 = vmatpush3.bf16.xpose.msra.mxu1 %v1159_v54  ;;  %2858 = vmatprep.mubr.msk.bf16.mxu1 %vm3461_vm0, %v3460_v3 }
 0x403   : > { %2862 = vmatprep.subr.bf16.mxu1 %v3460_v3 }
 0x409   : > { %2859 = vmatmul.mubr.msk.bf16.vlgmr.msra.gmra.mrb[24].mxu1 %vm890_vm1, %v1152_v55 }
 0x40a   : > { %2864 = vmatprep.mubr.msk.bf16.mxu1 %vm3461_vm0, %v3460_v3 }
 0x4c3   : > { %v3971_v56 = vpop.f32.mrb[12].mxu1 }
 0x4c4   : > { %v2842_v57 = vpop.f32.mrb[13].mxu1 }
 0x4c5   : > { %v1052_v58 = vpop.f32.mrb[14].mxu1 }
 0x4c6   : > { %v2843_v59 = vpop.f32.mrb[15].mxu1 }
 0x4cb   : > { %v3973_v60 = vpop.f32.mrb[16].mxu1 }
 0x4cc   : > { %v2848_v61 = vpop.f32.mrb[17].mxu1 }
 0x4cd   : > { %v1098_v62 = vpop.f32.mrb[18].mxu1 }
 0x4ce   : > { %v2849_v63 = vpop.f32.mrb[19].mxu1 }
 0x4d4   : > { %v1145_v0 = vpop.f32.mrb[20].mxu1 }
 0x4d5   : > { %v2854_v1 = vpop.f32.mrb[21].mxu1  ;;  %v1201_v2 = vsel %vm983_vm2, %v1145_v0, -inf }
 0x4d6   : > { %1202 = vmax.xlane.f32.xlu0 %v1201_v2  ;;  %v1148_v4 = vpop.f32.mrb[22].mxu1 }
 0x4d7   : > { %v2855_v5 = vpop.f32.mrb[23].mxu1 }
 0x4dc   : > { %v1195_v6 = vpop.f32.mrb[24].mxu1 }
 0x4dd   : > { %v2860_v7 = vpop.f32.mrb[25].mxu1  ;;  %v1204_v8 = vsel %vm983_vm2, %v1195_v6, -inf }
 0x4de   : > { %1205 = vmax.xlane.f32.xlu1 %v1204_v8  ;;  %v1198_v9 = vpop.f32.mrb[26].mxu1 }
 0x4df   : > { %v2861_v10 = vpop.f32.mrb[27].mxu1 }
 0x4ef   : > { %1273 = vrot.lane.b32.xlu1 %v3950_v40, %s3462_s13 }
 0x4f3   : > { %1323 = vrot.lane.b32.xlu1 %v3889_v41, %s3463_s21 }
 0x4f7   : > { %1373 = vrot.lane.b32.xlu1 %v3894_v49, %s3463_s21 }
 0x4fb   : > { %1371 = vrot.lane.b32.xlu1 %v3905_v53, %s3463_s21 }
 0x563   : > { %v1203_v11 = vpop.xlane.xlu0 %1202 }
 0x564   : > { %v1207_v12 = vsub.f32 %v1145_v0, %v1203_v11 }
 0x566   : > { %v1209_v13 = vmul.f32 1.442695, %v1207_v12 }
 0x568   : > { %3147 = vpow2.f32 %v1209_v13 }
 0x56b   : > { %v1206_v14 = vpop.xlane.xlu1 %1205 }
 0x56c   : > { %v1208_v15 = vsub.f32 %v1195_v6, %v1206_v14 }
 0x56e   : > { %v1211_v16 = vmul.f32 1.442695, %v1208_v15 }
 0x56f   : > { %v1274_v17 = vpop.permute.xlu1 %1273 }
 0x570   : > { %3149 = vpow2.f32 %v1211_v16  ;;  %v1279_v39 = vsel %vm1011_vm3, %v1274_v17, 0 }
 0x572   : > { %v3148_v18 = vpop.eup %3147 }
 0x573   : > { %v1324_v19 = vpop.permute.xlu1 %1323  ;;  %v1213_v20 = vsel %vm983_vm2, %v3148_v18, 0.0 }
 0x574   : > { %v1329_v21 = vsel %vm890_vm1, %v1324_v19, 0  ;;  %1214 = vadd.xlane.f32.xlu0 %v1213_v20 }
 0x575   : > { %2875 = vmatpush3.bf16.xpose.msra.mxu0 %v1329_v21 }
 0x576   : > { %2886 = vmatprep.subr.bf16.mxu0 %v3460_v3 }
 0x577   : > { %v1374_v45 = vpop.permute.xlu1 %1373 }
 0x578   : > { %v1379_v46 = vsel %vm890_vm1, %v1374_v45, 0 }
 0x57a   : > { %v3150_v22 = vpop.eup %3149 }
 0x57b   : > { %v1216_v23 = vsel %vm983_vm2, %v3150_v22, 0.0  ;;  %v1372_v47 = vpop.permute.xlu1 %1371 }
 0x57c   : > { %1217 = vadd.xlane.f32.xlu0 %v1216_v23 }
 0x592   : > { %1225 = vrot.lane.b32.xlu0 %v3939_v33, %s3462_s13 }
 0x596   : > { %1321 = vrot.lane.b32.xlu0 %v3896_v50, %s3463_s21 }
 0x601   : > { %v1215_v24 = vpop.xlane.xlu0 %1214 }
 0x602   : > { %3151 = vrcp.f32 %v1215_v24 }
 0x609   : > { %v1218_v27 = vpop.xlane.xlu0 %1217 }
 0x60a   : > { %3153 = vrcp.f32 %v1218_v27 }
 0x60c   : > { %v3152_v28 = vpop.eup %3151 }
 0x60d   : > { %v1220_v29 = vmul.f32 %v3152_v28, %v3148_v18  ;;  %v1226_v35 = vpop.permute.xlu0 %1225 }
 0x60e   : > { %v1231_v36 = vsel %vm1011_vm3, %v1226_v35, 0 }
 0x60f   : > { %2863 = vmatpush3.bf16.msra.mxu1 %v1231_v36  ;;  %v1223_v37 = vpack.c.bf16 %v1220_v29, %v1220_v29 }
 0x610   : > { %2868 = vmatprep.subr.bf16.mxu1 %v3460_v3 }
 0x611   : > { %v1322_v38 = vpop.permute.xlu0 %1321 }
 0x612   : > { %2865 = vmatmul.mubr.msk.bf16.vlgmr.msra.gmra.mrb[28].mxu1 %vm983_vm2, %v1223_v37  ;;  %2877 = vmatmul.mubr.msk.bf16.vlgmr.msra.gmra.mrb[8].mxu0 %vm890_vm1, %v1322_v38 }
 0x613   : > { %2869 = vmatpush3.bf16.msra.mxu1 %v1279_v39  ;;  %2870 = vmatprep.mubr.msk.bf16.mxu1 %vm3461_vm0, %v3460_v3 }
 0x614   : > { %v3154_v42 = vpop.eup %3153  ;;  %2880 = vmatprep.subr.bf16.mxu1 %v3460_v3  ;;  %2888 = vmatprep.mubr.msk.bf16.mxu0 %vm3461_vm0, %v3460_v3 }
 0x615   : > { %v1222_v43 = vmul.f32 %v3154_v42, %v3150_v22 }
 0x617   : > { %v1224_v44 = vpack.c.bf16 %v1222_v43, %v1222_v43 }
 0x61a   : > { %2871 = vmatmul.mubr.msk.bf16.vlgmr.msra.gmra.mrb[32].mxu1 %vm983_vm2, %v1224_v44 }
 0x61b   : > { %2882 = vmatprep.mubr.msk.bf16.mxu1 %vm3461_vm0, %v3460_v3 }
 0x61c   : > { %2881 = vmatpush3.bf16.xpose.msra.mxu1 %v1379_v46 }
 0x61d   : > { %2892 = vmatprep.subr.bf16.mxu1 %v3460_v3 }
 0x623   : > { %2883 = vmatmul.mubr.msk.bf16.vlgmr.msra.gmra.mrb[36].mxu1 %vm890_vm1, %v1372_v47 }
 0x624   : > { %2894 = vmatprep.mubr.msk.bf16.mxu1 %vm3461_vm0, %v3460_v3 }
 0x6e5   : > { %v4011_v48 = vpop.f32.mrb[28].mxu1  ;;  %v1365_v51 = vpop.f32.mrb[8].mxu0 }
 0x6e6   : > { %v2866_v52 = vpop.f32.mrb[29].mxu1  ;;  %v2878_v54 = vpop.f32.mrb[9].mxu0  ;;  %v1421_v55 = vsel %vm983_vm2, %v1365_v51, -inf }
 0x6e7   : > { %v1270_v57 = vpop.f32.mrb[30].mxu1  ;;  %1422 = vmax.xlane.f32.xlu0 %v1421_v55  ;;  %v1368_v58 = vpop.f32.mrb[10].mxu0 }
 0x6e8   : > { %v2867_v59 = vpop.f32.mrb[31].mxu1  ;;  %v2879_v61 = vpop.f32.mrb[11].mxu0 }
 0x6ed   : > { %v4014_v62 = vpop.f32.mrb[32].mxu1 }
 0x6ee   : > { %v3052_v63 = vpack.i.bf16 %v4014_v62, %v4011_v48  ;;  %v2872_v0 = vpop.f32.mrb[33].mxu1 }
 0x6ef   : > { %v1318_v1 = vpop.f32.mrb[34].mxu1 }
 0x6f0   : > { %v2873_v2 = vpop.f32.mrb[35].mxu1 }
 0x6f6   : > { %v1415_v4 = vpop.f32.mrb[36].mxu1 }
 0x6f7   : > { %v2884_v5 = vpop.f32.mrb[37].mxu1  ;;  %v1424_v6 = vsel %vm983_vm2, %v1415_v4, -inf }
 0x6f8   : > { %1425 = vmax.xlane.f32.xlu1 %v1424_v6  ;;  %v1418_v7 = vpop.f32.mrb[38].mxu1 }
 0x6f9   : > { %v2885_v8 = vpop.f32.mrb[39].mxu1 }
 0x709   : > { %1493 = vrot.lane.b32.xlu1 %v3950_v40, %s3463_s21 }
 0x70d   : > { %1543 = vrot.lane.b32.xlu1 %v3889_v41, %s3464_s2 }
 0x711   : > { %1593 = vrot.lane.b32.xlu1 %v3894_v49, %s3464_s2 }
 0x715   : > { %1591 = vrot.lane.b32.xlu1 %v3905_v53, %s3464_s2 }
 0x774   : > { %v1423_v9 = vpop.xlane.xlu0 %1422 }
 0x775   : > { %v1427_v10 = vsub.f32 %v1365_v51, %v1423_v9 }
 0x777   : > { %v1429_v11 = vmul.f32 1.442695, %v1427_v10 }
 0x779   : > { %3155 = vpow2.f32 %v1429_v11 }
 0x783   : > { %v3156_v12 = vpop.eup %3155 }
 0x784   : > { %v1433_v13 = vsel %vm983_vm2, %v3156_v12, 0.0 }
 0x785   : > { %v1426_v14 = vpop.xlane.xlu1 %1425  ;;  %1434 = vadd.xlane.f32.xlu0 %v1433_v13 }
 0x786   : > { %v1428_v15 = vsub.f32 %v1415_v4, %v1426_v14 }
 0x788   : > { %v1431_v16 = vmul.f32 1.442695, %v1428_v15 }
 0x789   : > { %v1494_v17 = vpop.permute.xlu1 %1493 }
 0x78a   : > { %3157 = vpow2.f32 %v1431_v16  ;;  %v1499_v41 = vsel %vm1011_vm3, %v1494_v17, 0 }
 0x78b   : > { %2893 = vmatpush3.bf16.msra.mxu1 %v1499_v41 }
 0x78c   : > { %2904 = vmatprep.subr.bf16.mxu1 %v3460_v3 }
 0x78d   : > { %v1544_v24 = vpop.permute.xlu1 %1543 }
 0x78e   : > { %v1549_v35 = vsel %vm890_vm1, %v1544_v24, 0  ;;  %v3095_v24 = vld [vmem:[%s3800_s19 + $0xe0] sm:$0xff]  }
 0x791   : > { %v1594_v29 = vpop.permute.xlu1 %1593 }
 0x792   : > { %v1599_v37 = vsel %vm890_vm1, %v1594_v29, 0 }
 0x794   : > { %v3158_v49 = vpop.eup %3157 }
 0x795   : > { %v1436_v53 = vsel %vm983_vm2, %v3158_v49, 0.0  ;;  %v1592_v39 = vpop.permute.xlu1 %1591 }
 0x796   : > { %1437 = vadd.xlane.f32.xlu0 %v1436_v53 }
 0x7ac   : > { %1445 = vrot.lane.b32.xlu0 %v3939_v33, %s3463_s21 }
 0x7b0   : > { %1541 = vrot.lane.b32.xlu0 %v3896_v50, %s3464_s2 }
 0x812   : > { %v1435_v18 = vpop.xlane.xlu0 %1434 }
 0x813   : > { %3159 = vrcp.f32 %v1435_v18 }
 0x81d   : > { %v3160_v19 = vpop.eup %3159 }
 0x81e   : > { %v1440_v21 = vmul.f32 %v3160_v19, %v3156_v12 }
 0x820   : > { %v1443_v27 = vpack.c.bf16 %v1440_v21, %v1440_v21  ;;  %v3092_v21 = vld [vmem:[%s3800_s19 + $0xc8] sm:$0xff]  }
 0x823   : > { %v1438_v20 = vpop.xlane.xlu0 %1437 }
 0x824   : > { %3161 = vrcp.f32 %v1438_v20  ;;  %v3091_v20 = vld [vmem:[%s3800_s19 + $0xc0] sm:$0xff]  }
 0x827   : > { %v1446_v22 = vpop.permute.xlu0 %1445 }
 0x828   : > { %v1451_v23 = vsel %vm1011_vm3, %v1446_v22, 0  ;;  %v3093_v22 = vld [vmem:[%s3800_s19 + $0xd0] sm:$0xff]  }
 0x829   : > { %2887 = vmatpush3.bf16.msra.mxu0 %v1451_v23  ;;  %v3094_v23 = vld [vmem:[%s3800_s19 + $0xd8] sm:$0xff]  }
 0x82a   : > { %2898 = vmatprep.subr.bf16.mxu0 %v3460_v3 }
 0x82b   : > { %v1542_v38 = vpop.permute.xlu0 %1541 }
 0x82c   : > { %2889 = vmatmul.mubr.msk.bf16.vlgmr.msra.gmra.mrb[12].mxu0 %vm983_vm2, %v1443_v27  ;;  %v3096_v27 = vld [vmem:[%s3800_s19 + $0xe8] sm:$0xff]  }
 0x82d   : > { %2900 = vmatprep.mubr.msk.bf16.mxu0 %vm3461_vm0, %v3460_v3 }
 0x82e   : > { %v3162_v50 = vpop.eup %3161 }
 0x82f   : > { %v1442_v28 = vmul.f32 %v3162_v50, %v3158_v49  ;;  %v3097_v50 = vld [vmem:[%s3800_s19 + $0xf0] sm:$0xff]  }
 0x831   : > { %v1444_v36 = vpack.c.bf16 %v1442_v28, %v1442_v28  ;;  %v3098_v28 = vld [vmem:[%s3800_s19 + $0xf8] sm:$0xff]  }
 0x832   : > { %2899 = vmatpush3.bf16.xpose.msra.mxu0 %v1549_v35 }
 0x833   : > { %2895 = vmatmul.mubr.msk.bf16.vlgmr.msra.gmra.mrb[40].mxu1 %vm983_vm2, %v1444_v36  ;;  %2910 = vmatprep.subr.bf16.mxu0 %v3460_v3 }
 0x834   : > { %2905 = vmatpush3.bf16.xpose.msra.mxu1 %v1599_v37  ;;  %2906 = vmatprep.mubr.msk.bf16.mxu1 %vm3461_vm0, %v3460_v3 }
 0x835   : > { %2916 = vmatprep.subr.bf16.mxu1 %v3460_v3 }
 0x839   : > { %2901 = vmatmul.mubr.msk.bf16.vlgmr.msra.gmra.mrb[16].mxu0 %vm890_vm1, %v1542_v38 }
 0x83a   : > { %2912 = vmatprep.mubr.msk.bf16.mxu0 %vm3461_vm0, %v3460_v3 }
 0x83b   : > { %2907 = vmatmul.mubr.msk.bf16.vlgmr.msra.gmra.mrb[44].mxu1 %vm890_vm1, %v1592_v39 }
 0x83c   : > { %2918 = vmatprep.mubr.msk.bf16.mxu1 %vm3461_vm0, %v3460_v3 }
 0x8ff   : > { %v1487_v42 = vpop.f32.mrb[12].mxu0 }
 0x900   : > { %v2890_v43 = vpop.f32.mrb[13].mxu0 }
 0x901   : > { %v1490_v44 = vpop.f32.mrb[14].mxu0 }
 0x902   : > { %v2891_v45 = vpop.f32.mrb[15].mxu0 }
 0x906   : > { %v1535_v46 = vpop.f32.mrb[40].mxu1 }
 0x907   : > { %v3057_v47 = vpack.i.bf16 %v1535_v46, %v1487_v42  ;;  %v2896_v51 = vpop.f32.mrb[41].mxu1 }
 0x908   : > { %v1538_v52 = vpop.f32.mrb[42].mxu1 }
 0x909   : > { %v2897_v54 = vpop.f32.mrb[43].mxu1 }
 0x90c   : > { %v1585_v55 = vpop.f32.mrb[16].mxu0 }
 0x90d   : > { %v2902_v57 = vpop.f32.mrb[17].mxu0  ;;  %v1641_v58 = vsel %vm983_vm2, %v1585_v55, -inf }
 0x90e   : > { %v1635_v59 = vpop.f32.mrb[44].mxu1  ;;  %1642 = vmax.xlane.f32.xlu0 %v1641_v58  ;;  %v1588_v61 = vpop.f32.mrb[18].mxu0 }
 0x90f   : > { %v2903_v0 = vpop.f32.mrb[19].mxu0  ;;  %v2908_v1 = vpop.f32.mrb[45].mxu1  ;;  %v1644_v2 = vsel %vm983_vm2, %v1635_v59, -inf }
 0x910   : > { %1645 = vmax.xlane.f32.xlu1 %v1644_v2  ;;  %v1638_v4 = vpop.f32.mrb[46].mxu1 }
 0x911   : > { %v2909_v5 = vpop.f32.mrb[47].mxu1 }
 0x912   : > { %v1796_v5 = vsub.s32 3, %v3874_v30 }
 0x921   : > { %1713 = vrot.lane.b32.xlu1 %v3950_v40, %s3464_s2 }
 0x925   : > { %3053 = vrot.lane.b32.xlu1 %v3052_v63, %s3464_s2 }
 0x929   : > { %3058 = vrot.lane.b32.xlu1 %v3057_v47, %s3463_s21 }
 0x99b   : > { %v1643_v6 = vpop.xlane.xlu0 %1642 }
 0x99c   : > { %v1647_v7 = vsub.f32 %v1585_v55, %v1643_v6  ;;  %v1797_v6 = vrot.slane %v3880_v32, %v1796_v5 }
 0x99d   : > { %v1646_v8 = vpop.xlane.xlu1 %1645 }
 0x99e   : > { %v1649_v9 = vmul.f32 1.442695, %v1647_v7  ;;  %v1648_v10 = vsub.f32 %v1635_v59, %v1646_v8 }
 0x9a0   : > { %3163 = vpow2.f32 %v1649_v9  ;;  %v1651_v11 = vmul.f32 1.442695, %v1648_v10 }
 0x9a1   : > { %v1714_v12 = vpop.permute.xlu1 %1713 }
 0x9a2   : > { %3165 = vpow2.f32 %v1651_v11  ;;  %v1719_v13 = vsel %vm1011_vm3, %v1714_v12, 0 }
 0x9a3   : > { %2917 = vmatpush3.bf16.msra.mxu1 %v1719_v13  ;;  %v3099_v13 = vld [vmem:[%s3813_s17] ss:$8 sps:$4 sm:$0xff]  }
 0x9a5   : > { %v3054_v45 = vpop.permute.xlu1 %3053 }
 0x9a6   : > { %v3056_v47 = vunpack.i.h.bf16 %v3054_v45  ;;  %v3055_v51 = vunpack.i.l.bf16 %v3054_v45  ;;  %v3132_v45 = vld [vmem:[%s3815_s22 + $0x20] sm:$0xff]  }
 0x9a8   : > { %v1786_v55 = vsel %vm890_vm1, %v3973_v60, %v3056_v47  ;;  %v1785_v57 = vsel %vm890_vm1, %v3971_v56, %v3055_v51 }
 0x9a9   : > { %v3059_v46 = vpop.permute.xlu1 %3058 }
 0x9aa   : > { %v3164_v40 = vpop.eup %3163  ;;  %v3061_v52 = vunpack.i.h.bf16 %v3059_v46  ;;  %v3060_v54 = vunpack.i.l.bf16 %v3059_v46  ;;  %v3133_v46 = vld [vmem:[%s3815_s22 + $0x68] sm:$0xff]  }
 0x9ab   : > { %v1653_v14 = vsel %vm983_vm2, %v3164_v40, 0.0 }
 0x9ac   : > { %v3166_v15 = vpop.eup %3165  ;;  %1654 = vadd.xlane.f32.xlu0 %v1653_v14  ;;  %v1789_v61 = vsel %vm1787_vm4, %v1786_v55, %v3061_v52  ;;  %v1788_v0 = vsel %vm1787_vm4, %v1785_v57, %v3060_v54  ;;  %v3104_v14 = vld [vmem:[%s3813_s17 + $0x14] ss:$8 sps:$4 sm:$0xff]   ;;  %v1914_v57 = vsub.s32 4, %v3874_v30 }
 0x9ad   : > { %v1656_v48 = vsel %vm983_vm2, %v3166_v15, 0.0 }
 0x9b0   : > { %1657 = vadd.xlane.f32.xlu0 %v1656_v48 }
 0x9c6   : > { %1665 = vrot.lane.b32.xlu0 %v3939_v33, %s3464_s2 }
 0xa39   : > { %v1655_v62 = vpop.xlane.xlu0 %1654 }
 0xa3a   : > { %3167 = vrcp.f32 %v1655_v62 }
 0xa3d   : > { %v1658_v63 = vpop.xlane.xlu0 %1657 }
 0xa3e   : > { %3169 = vrcp.f32 %v1658_v63 }
 0xa41   : > { %v1666_v16 = vpop.permute.xlu0 %1665 }
 0xa42   : > { %v1671_v17 = vsel %vm1011_vm3, %v1666_v16, 0 }
 0xa43   : > { %2911 = vmatpush3.bf16.msra.mxu0 %v1671_v17 }
 0xa44   : > { %v3168_v41 = vpop.eup %3167  ;;  %2922 = vmatprep.subr.bf16.mxu0 %v3460_v3 }
 0xa45   : > { %v1660_v49 = vmul.f32 %v3168_v41, %v3164_v40  ;;  %v3101_v40 = vld [vmem:[%s3813_s17 + $0x4] ss:$8 sps:$4 sm:$0xff]  }
 0xa46   : > { %2032 = vmatprep.subr.bf16.mxu1 %v3101_v40 }
 0xa47   : > { %v1663_v53 = vpack.c.bf16 %v1660_v49, %v1660_v49  ;;  %v3107_v49 = vld [vmem:[%s3813_s17 + $0x24] ss:$8 sps:$4 sm:$0xff]  }
 0xa48   : > { %v3170_v18 = vpop.eup %3169 }
 0xa49   : > { %v1662_v19 = vmul.f32 %v3170_v18, %v3166_v15  ;;  %2913 = vmatmul.mubr.msk.bf16.vlgmr.msra.gmra.mrb[20].mxu0 %vm983_vm2, %v1663_v53  ;;  %v3102_v15 = vld [vmem:[%s3813_s17 + $0x10] ss:$8 sps:$4 sm:$0xff]   ;;  %v3105_v53 = vld [vmem:[%s3813_s17 + $0x20] ss:$8 sps:$4 sm:$0xff]   ;;  %v3110_v18 = vld [vmem:[%s3813_s17 + $0x34] ss:$8 sps:$4 sm:$0xff]  }
 0xa4a   : > { %2938 = vmatprep.mubr.msk.bf16.mxu0 %vm3461_vm0, %v3460_v3  ;;  %2923 = vmatpush3.bf16.msra.mxu0 %v3091_v20  ;;  %v3111_v20 = vld [vmem:[%s3813_s17 + $0x40] ss:$8 sps:$4 sm:$0xff]  }
 0xa4b   : > { %v1664_v33 = vpack.c.bf16 %v1662_v19, %v1662_v19  ;;  %2924 = vmatprep.subr.bf16.mxu0 %v3460_v3  ;;  %v3108_v19 = vld [vmem:[%s3813_s17 + $0x30] ss:$8 sps:$4 sm:$0xff]  }
 0xa4d   : > { %2919 = vmatmul.mubr.msk.bf16.vlgmr.msra.gmra.mrb[48].mxu1 %vm983_vm2, %v1664_v33  ;;  %v3113_v33 = vld [vmem:[%s3813_s17 + $0x44] ss:$8 sps:$4 sm:$0xff]  }
 0xa4e   : > { %2925 = vmatpush3.bf16.msra.mxu0 %v3092_v21  ;;  %2033 = vmatpush1.bf16.msra.mxu1 %v3099_v13  ;;  %v3116_v21 = vld [vmem:[%s3813_s17 + $0x54] ss:$8 sps:$4 sm:$0xff]   ;;  %v522_v13 = vld [vmem:[%s3811_s12] sm:$0x3] }
 0xa4f   : > { %2926 = vmatprep.subr.bf16.mxu0 %v3460_v3  ;;  %2034 = vmatprep.subr.bf16.mxu1 %v3104_v14  ;;  %v1945_v40 = vrot.slane %v522_v13, %v3885_v34 }
 0xa52   : > { %2927 = vmatpush3.bf16.msra.mxu0 %v3093_v22  ;;  %2035 = vmatpush1.bf16.msra.mxu1 %v3102_v15  ;;  %v3114_v22 = vld [vmem:[%s3813_s17 + $0x50] ss:$8 sps:$4 sm:$0xff]  }
 0xa53   : > { %2928 = vmatprep.subr.bf16.mxu0 %v3460_v3  ;;  %2036 = vmatprep.subr.bf16.mxu1 %v3107_v49 }
 0xa56   : > { %2929 = vmatpush3.bf16.msra.mxu0 %v3094_v23  ;;  %2037 = vmatpush1.bf16.msra.mxu1 %v3105_v53  ;;  %v3119_v23 = vld [vmem:[%s3813_s17 + $0x64] ss:$8 sps:$4 sm:$0xff]  }
 0xa57   : > { %2930 = vmatprep.subr.bf16.mxu0 %v3460_v3  ;;  %2038 = vmatprep.subr.bf16.mxu1 %v3110_v18 }
 0xa5a   : > { %2931 = vmatpush3.bf16.msra.mxu0 %v3095_v24  ;;  %2039 = vmatpush1.bf16.msra.mxu1 %v3108_v19  ;;  %v3117_v24 = vld [vmem:[%s3813_s17 + $0x60] ss:$8 sps:$4 sm:$0xff]  }
 0xa5b   : > { %2932 = vmatprep.subr.bf16.mxu0 %v3460_v3  ;;  %2040 = vmatprep.subr.bf16.mxu1 %v3113_v33  ;;  %v2115_v33 = vsub.s32 6, %v3874_v30 }
 0xa5e   : > { %2933 = vmatpush3.bf16.msra.mxu0 %v3096_v27  ;;  %2041 = vmatpush1.bf16.msra.mxu1 %v3111_v20  ;;  %v3122_v27 = vld [vmem:[%s3813_s17 + $0x74] ss:$8 sps:$4 sm:$0xff]  }
 0xa5f   : > { %2934 = vmatprep.subr.bf16.mxu0 %v3460_v3  ;;  %2042 = vmatprep.subr.bf16.mxu1 %v3116_v21  ;;  %v3179_v21 = vld [vmem:[%s3817_s7] sm:$0xff] }
 0xa62   : > { %2935 = vmatpush3.bf16.msra.mxu0 %v3097_v50  ;;  %2043 = vmatpush1.bf16.msra.mxu1 %v3114_v22  ;;  %v3120_v50 = vld [vmem:[%s3813_s17 + $0x70] ss:$8 sps:$4 sm:$0xff]   ;;  %v2116_v22 = vrot.slane %v3179_v21, %v2115_v33 }
 0xa63   : > { %2936 = vmatprep.subr.bf16.mxu0 %v3460_v3  ;;  %2044 = vmatprep.subr.bf16.mxu1 %v3119_v23 }
 0xa66   : > { %2937 = vmatpush3.bf16.msra.mxu0 %v3098_v28  ;;  %2045 = vmatpush1.bf16.msra.mxu1 %v3117_v24  ;;  %v3465_v28 = vmov 0  }
 0xa67   : > { %2064 = vmatprep.mubr.bf16.mxu1 %v3465_v28  ;;  %2046 = vmatprep.subr.bf16.mxu1 %v3122_v27 }
 0xa6a   : > { %2047 = vmatpush1.bf16.msra.mxu1 %v3120_v50 }
 0xb1c   : > { %v1707_v29 = vpop.f32.mrb[20].mxu0 }
 0xb1d   : > { %v2914_v35 = vpop.f32.mrb[21].mxu0 }
 0xb1e   : > { %v1710_v36 = vpop.f32.mrb[22].mxu0  ;;  %v3124_v35 = vld [vmem:[%s3815_s22] sm:$0xff]  }
 0xb1f   : > { %v2915_v37 = vpop.f32.mrb[23].mxu0  ;;  %v3125_v36 = vld [vmem:[%s3815_s22 + $0x48] sm:$0xff]  }
 0xb20   : > { %v1755_v38 = vpop.f32.mrb[48].mxu1  ;;  %v3126_v37 = vld [vmem:[%s3815_s22 + $0x8] sm:$0xff]  }
 0xb21   : > { %v3062_v39 = vpack.i.bf16 %v1755_v38, %v1707_v29  ;;  %v2920_v42 = vpop.f32.mrb[49].mxu1  ;;  %v3123_v29 = vld [vmem:[%s3815_s22 + $0x40] sm:$0xff]   ;;  %v3127_v38 = vld [vmem:[%s3815_s22 + $0x50] sm:$0xff]  }
 0xb22   : > { %v1758_v43 = vpop.f32.mrb[50].mxu1  ;;  %2744 = vmatprep.subr.bf16.mxu0 %v3123_v29  ;;  %v3129_v42 = vld [vmem:[%s3815_s22 + $0x58] sm:$0xff]  }
 0xb23   : > { %v2921_v44 = vpop.f32.mrb[51].mxu1  ;;  %3063 = vrot.lane.b32.xlu0 %v3062_v39, %s3462_s13  ;;  %v3128_v39 = vld [vmem:[%s3815_s22 + $0x10] sm:$0xff]   ;;  %v3130_v43 = vld [vmem:[%s3815_s22 + $0x18] sm:$0xff]  }
 0xb24   : > { %v3131_v44 = vld [vmem:[%s3815_s22 + $0x60] sm:$0xff]  }
 0xb95   : > { %v3064_v3 = vpop.permute.xlu0 %3063 }
 0xb96   : > { %v3066_v58 = vunpack.i.h.bf16 %v3064_v3  ;;  %v3065_v59 = vunpack.i.l.bf16 %v3064_v3 }
 0xb98   : > { %v1792_v1 = vsel %vm1790_vm5, %v1789_v61, %v3066_v58  ;;  %v1791_v2 = vsel %vm1790_vm5, %v1788_v0, %v3065_v59  ;;  %v1915_v61 = vrot.slane %v3880_v32, %v1914_v57  ;;  %v1920_v0 = vsub.s32 5, %v3874_v30 }
 0xb99   : > { %v1793_v4 = vpack.c.bf16 %v1792_v1, %v1791_v2 }
 0xb9a   : > { %v1921_v5 = vrot.slane %v3880_v32, %v1920_v0  ;;  %v1949_v32 = vrot.slane %v522_v13, %v3877_v31 }
 0xb9b   : > { %2939 = vmatmul.mubr.bf16.vlgmr.msra.gmra.mrb[24].mxu0 %v1793_v4 }
 0xb9c   : > { %2745 = vmatpush3.bf16.msra.mxu0 %v3124_v35 }
 0xb9d   : > { %2746 = vmatprep.subr.bf16.mxu0 %v3125_v36 }
 0xba0   : > { %2747 = vmatpush3.bf16.msra.mxu0 %v3126_v37 }
 0xba1   : > { %2748 = vmatprep.subr.bf16.mxu0 %v3127_v38 }
 0xba4   : > { %2749 = vmatpush3.bf16.msra.mxu0 %v3128_v39 }
 0xba5   : > { %2750 = vmatprep.subr.bf16.mxu0 %v3129_v42 }
 0xba8   : > { %2751 = vmatpush3.bf16.msra.mxu0 %v3130_v43 }
 0xba9   : > { %2752 = vmatprep.subr.bf16.mxu0 %v3131_v44 }
 0xbac   : > { %2753 = vmatpush3.bf16.msra.mxu0 %v3132_v45 }
 0xbad   : > { %2754 = vmatprep.subr.bf16.mxu0 %v3133_v46 }
 0xc6e   : > { %v1880_v60 = vpop.f32.mrb[24].mxu0 }
 0xc6f   : > { %v1881_v7 = vadd.f32 %v1880_v60, %v1797_v6  ;;  %v2940_v8 = vpop.f32.mrb[25].mxu0 }
 0xc70   : > { %v1883_v56 = vpop.f32.mrb[26].mxu0 }
 0xc71   : > { %v1884_v9 = vadd.f32 %v1883_v56, %v1797_v6  ;;  %v2941_v10 = vpop.f32.mrb[27].mxu0  ;;  %v1887_v11 = vadd.f32 %v1881_v7, %v3860_v25  ;;  %v3134_v56 = vld [vmem:[%s3815_s22 + $0x28] sm:$0xff]  }
 0xc72   : > { %2755 = vmatpush3.bf16.msra.mxu0 %v3134_v56  ;;  %v3136_v10 = vld [vmem:[%s3815_s22 + $0x30] sm:$0xff]  }
 0xc73   : > { %1889 = vadd.xlane.f32.xlu1 %v1887_v11  ;;  %v1888_v12 = vadd.f32 %v1884_v9, %v3862_v26  ;;  %v3135_v9 = vld [vmem:[%s3815_s22 + $0x70] sm:$0xff]  }
 0xc74   : > { %2756 = vmatprep.subr.bf16.mxu0 %v3135_v9 }
 0xc75   : > { %1891 = vadd.xlane.f32.xlu0 %v1888_v12 }
 0xc76   : > { %2757 = vmatpush3.bf16.msra.mxu0 %v3136_v10 }
 0xd00   : > { %v1890_v48 = vpop.xlane.xlu1 %1889 }
 0xd01   : > { %v1894_v62 = vmul.f32 0.0078125, %v1890_v48 }
 0xd02   : > { %v1892_v63 = vpop.xlane.xlu0 %1891 }
 0xd03   : > { %v4101_v25 = vsub.f32 %v1887_v11, %v1894_v62  ;;  %v1895_v26 = vmul.f32 0.0078125, %v1892_v63  ;;  %v3137_v11 = vld [vmem:[%s3815_s22 + $0x78] sm:$0xff]  }
 0xd04   : > { %2758 = vmatprep.subr.bf16.mxu0 %v3137_v11 }
 0xd05   : > { %v4103_v16 = vsub.f32 %v1888_v12, %v1895_v26  ;;  %v1898_v17 = vmul.f32 %v4101_v25, %v4101_v25  ;;  %v3138_v12 = vld [vmem:[%s3815_s22 + $0x38] sm:$0xff]  }
 0xd06   : > { %2759 = vmatpush3.bf16.msra.mxu0 %v3138_v12 }
 0xd07   : > { %1900 = vadd.xlane.f32.xlu0 %v1898_v17  ;;  %v1899_v41 = vmul.f32 %v4103_v16, %v4103_v16 }
 0xd0b   : > { %1902 = vadd.xlane.f32.xlu0 %v1899_v41 }
 0xd94   : > { %v1901_v47 = vpop.xlane.xlu0 %1900 }
 0xd95   : > { %v1904_v51 = vmul.f32 0.0078125, %v1901_v47 }
 0xd97   : > { %v1906_v52 = vadd.f32 1e-05, %v1904_v51 }
 0xd98   : > { %v1903_v54 = vpop.xlane.xlu0 %1902 }
 0xd99   : > { %3171 = vrsqrt.f32 %v1906_v52  ;;  %v1905_v3 = vmul.f32 0.0078125, %v1903_v54 }
 0xd9b   : > { %v1907_v55 = vadd.f32 1e-05, %v1905_v3 }
 0xd9d   : > { %3173 = vrsqrt.f32 %v1907_v55 }
 0xda3   : > { %v3172_v58 = vpop.eup %3171 }
 0xda4   : > { %v1910_v59 = vmul.f32 %v3172_v58, %v4101_v25  ;;  %v2280_v58 = vsub.s32 7, %v3874_v30 }
 0xda6   : > { %v1916_v4 = vmul.f32 %v1915_v61, %v1910_v59  ;;  %v521_v59 = vld [vmem:[%s3817_s7 + $0x8] sm:$0xff] }
 0xda7   : > { %v3174_v1 = vpop.eup %3173 }
 0xda8   : > { %v1911_v2 = vmul.f32 %v3174_v1, %v4103_v16  ;;  %v1922_v60 = vadd.f32 %v1921_v5, %v1916_v4  ;;  %v2287_v1 = vrot.slane %v521_v59, %v3885_v34 }
 0xdaa   : > { %v1917_v6 = vmul.f32 %v1915_v61, %v1911_v2  ;;  %v2281_v61 = vrot.slane %v3179_v21, %v2280_v58 }
 0xdac   : > { %v1923_v7 = vadd.f32 %v1921_v5, %v1917_v6 }
 0xdae   : > { %v1940_v8 = vpack.c.bf16 %v1923_v7, %v1922_v60 }
 0xdb0   : > { %2065 = vmatmul.mubr.bf16.vlgmr.msra.gmra.mrb[52].mxu1 %v1940_v8 }
 0xe83   : > { %v2066_v14 = vpop.f32.mrb[52].mxu1 }
 0xe84   : > { %v2067_v15 = vadd.f32 %v2066_v14, %v1945_v40  ;;  %v2068_v48 = vpop.f32.mrb[53].mxu1 }
 0xe85   : > { %v2069_v62 = vadd.f32 %v2068_v48, %v1949_v32  ;;  %v2070_v63 = vpop.f32.mrb[54].mxu1 }
 0xe86   : > { %v2071_v25 = vadd.f32 %v2070_v63, %v1945_v40  ;;  %v2072_v26 = vpop.f32.mrb[55].mxu1  ;;  %v2075_v17 = vmax.f32 %v2067_v15, 0.0 }
 0xe87   : > { %v2073_v16 = vadd.f32 %v2072_v26, %v1949_v32  ;;  %v2076_v49 = vmax.f32 %v2069_v62, 0.0 }
 0xe88   : > { %v2077_v41 = vmax.f32 %v2071_v25, 0.0  ;;  %v2296_v25 = vld [vmem:[%s4261_s25] sm:$0x3] (!%p2661_p8) }
 0xe89   : > { %v2078_v53 = vmax.f32 %v2073_v16, 0.0  ;;  %v2322_v26 = vrot.slane (!%p2661_p8), %v2296_v25, %v3885_v34 }
 0xe8a   : > { %v2111_v18 = vpack.c.bf16 %v2077_v41, %v2075_v17  ;;  %v2328_v41 = vrot.slane (!%p2661_p8), %v2296_v25, %v3877_v31 }
 0xe8b   : > { %v2112_v19 = vpack.c.bf16 %v2078_v53, %v2076_v49 }
 0xe8d   : > { %2245 = vmatprep.mubr.bf16.mxu0 %v2112_v19 }
 0xe8e   : > { %2246 = vmatmul.mubr.bf16.vlgmr.msra.gmra.mrb[28].mxu0 %v2111_v18 }
 0xf61   : > { %v2760_v20 = vpop.f32.mrb[28].mxu0 }
 0xf62   : > { %v2761_v23 = vpop.f32.mrb[29].mxu0 }
 0xf63   : > { %v2762_v24 = vadd.f32 %v2761_v23, %v2760_v20  ;;  %v2763_v27 = vpop.f32.mrb[30].mxu0 }
 0xf64   : > { %v2764_v50 = vpop.f32.mrb[31].mxu0 }
 0xf65   : > { %v2248_v28 = vadd.f32 %v2762_v24, %v2116_v22  ;;  %v2765_v29 = vadd.f32 %v2764_v50, %v2763_v27 }
 0xf67   : > { %v2251_v35 = vadd.f32 %v2765_v29, %v2116_v22  ;;  %v2254_v36 = vadd.f32 %v2248_v28, %v1922_v60 }
 0xf69   : > { %2256 = vadd.xlane.f32.xlu1 %v2254_v36  ;;  %v2255_v37 = vadd.f32 %v2251_v35, %v1923_v7 }
 0xf6b   : > { %2258 = vadd.xlane.f32.xlu0 %v2255_v37 }
 0xff6   : > { %v2257_v38 = vpop.xlane.xlu1 %2256 }
 0xff7   : > { %v2260_v39 = vmul.f32 0.0078125, %v2257_v38 }
 0xff8   : > { %v2259_v42 = vpop.xlane.xlu0 %2258 }
 0xff9   : > { %v2262_v43 = vsub.f32 %v2254_v36, %v2260_v39  ;;  %v2261_v44 = vmul.f32 0.0078125, %v2259_v42 }
 0xffb   : > { %v2263_v45 = vsub.f32 %v2255_v37, %v2261_v44  ;;  %v2264_v46 = vmul.f32 %v2262_v43, %v2262_v43 }
 0xffd   : > { %2266 = vadd.xlane.f32.xlu1 %v2264_v46  ;;  %v2265_v47 = vmul.f32 %v2263_v45, %v2263_v45 }
 0xfff   : > { %2268 = vadd.xlane.f32.xlu0 %v2265_v47 }
0x108a   : > { %v2267_v51 = vpop.xlane.xlu1 %2266 }
0x108b   : > { %v2270_v52 = vmul.f32 0.0078125, %v2267_v51 }
0x108c   : > { %v2269_v54 = vpop.xlane.xlu0 %2268 }
0x108d   : > { %v2272_v3 = vadd.f32 1e-05, %v2270_v52  ;;  %v2271_v55 = vmul.f32 0.0078125, %v2269_v54 }
0x108f   : > { %3175 = vrsqrt.f32 %v2272_v3  ;;  %v2273_v57 = vadd.f32 1e-05, %v2271_v55 }
0x1091   : > { %3177 = vrsqrt.f32 %v2273_v57 }
0x1099   : > { %v3176_v0 = vpop.eup %3175 }
0x109a   : > { %v2276_v2 = vmul.f32 %v3176_v0, %v2262_v43 }
0x109b   : > { %v3178_v4 = vpop.eup %3177 }
0x109c   : > { %v2282_v5 = vmul.f32 %v2281_v61, %v2276_v2  ;;  %v2277_v6 = vmul.f32 %v3178_v4, %v2263_v45  ;;  %2295 = sbr.rel (%p2661_p8) target bundleno = 4572 (0x11dc), region = 84 }
0x109e   : > { %v2288_v60 = vadd.f32 %v2287_v1, %v2282_v5  ;;  %v2283_v7 = vmul.f32 %v2281_v61, %v2277_v6 }
0x10a0   : > { %2290 = vst [vmem:[#allocation11] sm:$0xff] %v2288_v60  ;;  %v2289_v8 = vadd.f32 %v2287_v1, %v2283_v7  ;;  %2297 = vadd.xlane.f32.xlu0 (!%p2661_p8), %v2288_v60 }
0x10a2   : > { %2291 = vst [vmem:[#allocation11 + $0x8] sm:$0xff] %v2289_v8 }
0x10a4   : > { %2299 = vadd.xlane.f32.xlu0 %v2289_v8 }
0x112d   : > { %v2298_v30 = vpop.xlane.xlu0 %2297 }
0x112e   : > { %v2301_v56 = vmul.f32 0.0078125, %v2298_v30 }
0x1130   : > { %v2303_v9 = vsub.f32 %v2288_v60, %v2301_v56 }
0x1131   : > { %v2300_v10 = vpop.xlane.xlu0 %2299 }
0x1132   : > { %v2302_v11 = vmul.f32 0.0078125, %v2300_v10  ;;  %v2305_v12 = vmul.f32 %v2303_v9, %v2303_v9 }
0x1134   : > { %v2304_v13 = vsub.f32 %v2289_v8, %v2302_v11  ;;  %2307 = vadd.xlane.f32.xlu1 %v2305_v12 }
0x1136   : > { %v2306_v40 = vmul.f32 %v2304_v13, %v2304_v13 }
0x1138   : > { %2309 = vadd.xlane.f32.xlu1 %v2306_v40 }
0x11c1   : > { %v2308_v32 = vpop.xlane.xlu1 %2307 }
0x11c2   : > { %v2311_v14 = vmul.f32 0.0078125, %v2308_v32 }
0x11c4   : > { %v2313_v15 = vadd.f32 1e-05, %v2311_v14 }
0x11c5   : > { %v2310_v48 = vpop.xlane.xlu1 %2309 }
0x11c6   : > { %3180 = vrsqrt.f32 %v2313_v15  ;;  %v2312_v62 = vmul.f32 0.0078125, %v2310_v48 }
0x11c8   : > { %v2314_v63 = vadd.f32 1e-05, %v2312_v62 }
0x11ca   : > { %3182 = vrsqrt.f32 %v2314_v63 }
0x11d0   : > { %v3181_v16 = vpop.eup %3180 }
0x11d1   : > { %v2317_v17 = vmul.f32 %v3181_v16, %v2303_v9 }
0x11d3   : > { %v2323_v49 = vmul.f32 %v2322_v26, %v2317_v17 }
0x11d4   : > { %v3183_v53 = vpop.eup %3182 }
0x11d5   : > { %v2329_v18 = vadd.f32 %v2328_v41, %v2323_v49  ;;  %v2318_v19 = vmul.f32 %v3183_v53, %v2304_v13 }
0x11d7   : > { %2331 = vst [vmem:[#allocation11] sm:$0xff] %v2329_v18  ;;  %v2324_v33 = vmul.f32 %v2322_v26, %v2318_v19 }
0x11d9   : > { %v2330_v20 = vadd.f32 %v2328_v41, %v2324_v33 }
0x11db   : > { %2332 = vst [vmem:[#allocation11 + $0x8] sm:$0xff] %v2330_v20 }
0x11dc PF: > { %p2987_p3 = scmp.eq.s32.totalorder %s3543_s11, 1  ;;  %s3466_s24 = smov [#allocation11]  }
0x11dd   : > { %s2342_s3 = sshll.u32 %s3466_s24, 4  ;;  %s2343_s3 = int_to_ptr.vmem [resolvable:$true] %s2342_s3 }
0x11de   : > { %s3360_s4 = scalar_lea.vmem %s2343_s3, 256  ;;  %p3367_p5 = scmp.lt.s32.totalorder %s2343_s3, %s2343_s3 }
0x11df   : > { %p3361_p12 = scmp.ne.s32.totalorder %s2343_s3, %s3360_s4  ;;  %p3368_p13 = scmp.lt.s32.totalorder %s3360_s4, %s3360_s4 }
0x11e1   : > { %p3362_p4 = pnand %p3361_p12, %p2987_p3  ;;  %p3369_p11 = por %p3368_p13, %p3367_p5 }
0x11e3   : > { %p3363_p1 = pneg %p3362_p4 }
0x11e5   : > { %p3370_p0 = pnand %p3369_p11, %p3363_p1 }
0x11e7   : > { %3373 = shalt.err (!%p3370_p0)
}
0x11e8   : > { %s4262_s8 = sld [smem:[#allocation24_spill]] }
0x11ee   : > { %s3374_s14 = scalar_lea.hbm %s4262_s8, 256 }
0x11ef   : > { %p3375_p7 = scmp.ne.s32.totalorder %s4262_s8, %s3374_s14  ;;  %p3380_p10 = scmp.lt.u32.totalorder %s3374_s14, %s4262_s8 }
0x11f1   : > { %p3376_p9 = pnand %p3375_p7, %p2987_p3 }
0x11f3   : > { %p3377_p2 = pneg %p3376_p9 }
0x11f5   : > { %p3382_p6 = pnand %p3380_p10, %p3377_p2 }
0x11f7   : > { %3385 = shalt.err (!%p3382_p6)
}
0x11f8   : > { %s3467_s16 = smov 128   ;;  %s3468_s26 = smov 8  }
0x11f9   : > { %2959 = dma.vmem_to_hbm [thread:$0]  (%p2987_p3), %s2343_s3, 256, %s4262_s8, [#allocation4], %s3467_s16, %s3467_s16, %s3468_s26  }
0x11fa   : > { %3423 = dma.done.wait (%p2987_p3), [#allocation4], 256  }
0x11fb   : > { %3425 = vsyncadd (%p2987_p3), [#allocation4], 4294967040 }
0x11fc PF: > { %s21_s10 = sadd.s32 1, %s3448_s10   ;;  %s4263_s17 = sld [smem:[#allocation16_spill]] }
0x11fd   : > { %p18_p8 = scmp.ge.s32.totalorder %s21_s10, 4   ;;  %s4264_s29 = sld [smem:[#allocation18_spill]] }
0x11fe   : > { %s4265_s22 = sld [smem:[#allocation17_spill]]  ;;  %s4266_s27 = smov %s3432_s28 }
0x11ff   : > { %s4268_s30 = smov %s3444_s9  ;;  %20 = sbr.rel (!%p18_p8) target bundleno = 12 (0xc), region = 146 }
0x1202   : > { %s4267_s28 = smov %s4263_s17 }
0x1204   : > { %s4269_s9 = smov %s4265_s22 }
0x1206   :  { %2358 = vsyncpa [#allocation3], 1 }
0x1207   :  { %2360 = vsyncpa [#allocation3 + $0x1], 1 }
0x1208   :  { %2361 = vsyncpa [#allocation6], 1 }
0x1209   :  { %2362 = vsyncpa [#allocation4], 1 }
0x120a   :  { %2364 = vsyncpa [#allocation4 + $0x1], 1 }

</bundles_post_ra>
